<compile_context>
chip_gen: v5e
topology: v5e:2x2
jax: 0.10.0
libtpu: 0.0.40
codegen_flags: <defaults>
</compile_context>

<pallas_src>
import functools

import jax
import jax.numpy as jnp
from jax import lax
from jax.experimental import pallas as pl
from jax.experimental.pallas import tpu as pltpu

DICE_W, BCE_W, FOCAL_W = 0.8, 0.1, 0.1
SMOOTH = 1.0
CLASS_WEIGHTS = (0.1, 1.0, 1.0, 1.2)   # nn.CrossEntropyLoss(weight=...)
POS_W_HOT = 5.0                        # pos_weight = [1, 5, 5, 5]

# Row layout of the (B, 24, 128) per-batch stats output (C == 4):
#   rows  0: 4  sum(sigmoid probs)          per class  (lane partials)
#   rows  4: 8  sum(raw preds)              per class
#   rows  8:12  sum(targets)                per class
#   rows 12:16  sum(sigmoid probs * target) per class
#   rows 16:20  sum(raw preds   * target)   per class
#   row  20     BCEWithLogits element-sum
#   row  21     CE sum(weight * nll)
#   row  22     CE sum(weight)
#   row  23     "needs sigmoid" indicator (any pred < 0 or > 1)
_ROW_PRED_SIG, _ROW_PRED_RAW, _ROW_TRUE = 0, 4, 8
_ROW_INTER_SIG, _ROW_INTER_RAW = 12, 16
_ROW_BCE, _ROW_WNLL, _ROW_WSUM, _ROW_OOR = 20, 21, 22, 23
_N_STAT_ROWS = 24


def _loss_stats_kernel(pred_ref, true_ref, out_ref, accC_ref, acc1_ref, *,
                       num_classes, sub_tile, group_rows, hw, need_mask):
    s = pl.program_id(1)
    ns = pl.num_programs(1)
    ngrp = sub_tile // group_rows

    def gsum_c(v):        # (C, ST, 128) -> (C, G, 128): pure vreg adds
        if ngrp == 1:
            return v
        return jnp.sum(v.reshape(num_classes, ngrp, group_rows, 128), axis=1)

    def gsum(v):          # (ST, 128) -> (G, 128)
        if ngrp == 1:
            return v
        return jnp.sum(v.reshape(ngrp, group_rows, 128), axis=0)

    def gmax(v):
        if ngrp == 1:
            return v
        return jnp.max(v.reshape(ngrp, group_rows, 128), axis=0)

    @pl.when(s == 0)
    def _init():
        accC_ref[...] = jnp.zeros_like(accC_ref)
        acc1_ref[...] = jnp.zeros_like(acc1_ref)

    x = pred_ref[0]            # (C, ST, 128) logits for this (batch, tile)
    y = true_ref[0]            # (C, ST, 128) targets

    lane = lax.broadcasted_iota(jnp.int32, (sub_tile, 128), 1)
    if need_mask:              # ragged lane tail and/or partial last tile
        sub = lax.broadcasted_iota(jnp.int32, (sub_tile, 128), 0)
        flat = (s * sub_tile + sub) * 128 + lane       # global spatial index
        valid = flat < hw
        x = jnp.where(valid, x, 0.0)
        y = jnp.where(valid, y, 0.0)

    # ---- shared sigmoid / log-sigmoid pieces (numerically stable forms) ----
    e = jnp.exp(-jnp.abs(x))
    log1pe = jnp.log(1.0 + e)
    denom = 1.0 + e
    r = pl.reciprocal(denom, approx=True)
    r = r * (2.0 - denom * r)                   # one Newton step -> ~f32 accuracy
    sig = jnp.where(x >= 0.0, r, e * r)         # sigmoid(x)
    log_sig = -(jnp.maximum(-x, 0.0) + log1pe)  # log(sigmoid(x))
    log_1m = -(jnp.maximum(x, 0.0) + log1pe)    # log(1 - sigmoid(x))

    # ---- dice partial sums, both prob variants (flag resolved at the end) ----
    sig_d = jnp.where(valid, sig, 0.0) if need_mask else sig
    accC_ref[0] += gsum_c(sig_d)                # sum(sigmoid probs)
    accC_ref[1] += gsum_c(x)                    # sum(raw preds)
    accC_ref[2] += gsum_c(y)                    # sum(targets)
    accC_ref[3] += gsum_c(sig * y)              # intersection (sigmoid)
    accC_ref[4] += gsum_c(x * y)                # intersection (raw)

    # ---- BCEWithLogits, pos_weight=[1,5,5,5] broadcast along trailing W==4 ----
    pw = jnp.where((lane & 3) == 0, 1.0, POS_W_HOT)          # (ST, 128)
    bce = -(pw * y * log_sig + (1.0 - y) * log_1m)           # (C, ST, 128)
    bce = jnp.sum(bce, axis=0)                               # class sum: vreg adds
    if need_mask:
        bce = jnp.where(valid, bce, 0.0)
    acc1_ref[0] += gsum(bce)

    # ---- weighted CrossEntropy over argmax(y_true) --------------------------
    m = jnp.max(x, axis=0)                                   # (ST, 128)
    lse = m + jnp.log(jnp.sum(jnp.exp(x - m), axis=0))
    ymax = jnp.max(y, axis=0)
    tgt = jnp.full((sub_tile, 128), float(num_classes), jnp.float32)
    for c in reversed(range(num_classes)):                   # first-occurrence argmax
        tgt = jnp.where(y[c] == ymax, float(c), tgt)
    x_t = jnp.zeros((sub_tile, 128), jnp.float32)
    wt = jnp.zeros((sub_tile, 128), jnp.float32)
    for c in range(num_classes):
        hit = tgt == float(c)
        x_t = jnp.where(hit, x[c], x_t)
        wt = jnp.where(hit, CLASS_WEIGHTS[c], wt)
    if need_mask:
        wt = jnp.where(valid, wt, 0.0)
    acc1_ref[1] += gsum(wt * (lse - x_t))                    # weighted NLL
    acc1_ref[2] += gsum(wt)                                  # weight sum

    # ---- running "needs sigmoid" indicator (min < 0 or max > 1) -------------
    oor = jnp.max(jnp.where(jnp.logical_or(x < 0.0, x > 1.0), 1.0, 0.0), axis=0)
    acc1_ref[3] = jnp.maximum(acc1_ref[3], gmax(oor))

    # ---- per-batch finalize: reduce sublanes, write lane-dense stats rows ----
    @pl.when(s == ns - 1)
    def _finalize():
        for q in range(5):
            out_ref[0, q * num_classes:(q + 1) * num_classes, :] = jnp.sum(
                accC_ref[q], axis=1)
        base = 5 * num_classes
        out_ref[0, base + 0:base + 1, :] = jnp.sum(acc1_ref[0], axis=0, keepdims=True)
        out_ref[0, base + 1:base + 2, :] = jnp.sum(acc1_ref[1], axis=0, keepdims=True)
        out_ref[0, base + 2:base + 3, :] = jnp.sum(acc1_ref[2], axis=0, keepdims=True)
        out_ref[0, base + 3:base + 4, :] = jnp.max(acc1_ref[3], axis=0, keepdims=True)


def brats_combined_loss(y_pred, y_true, *, max_sub_tile=64):
    """BraTSCombinedLoss forward: 0.8*dice + 0.1*BCEWithLogits + 0.1*weighted CE.

    y_pred, y_true: (B, C, H, W) float32, NCHW (PyTorch convention).
    Requires C == 4 and W == 4 (hard-coded pos_weight / class_weights).
    """
    B, C, H, W = y_pred.shape
    assert C == 4, "class_weights are hard-coded for 4 classes"
    assert W == 4, "pos_weight (len 4) broadcasts along the trailing W dim in PyTorch"

    y_pred = y_pred.astype(jnp.float32)
    y_true = y_true.astype(jnp.float32)
    HW = H * W
    nsub = pl.cdiv(HW, 128)                     # 128-lane rows per (batch, class)

    pred = y_pred.reshape(B, C, HW)
    true = y_true.reshape(B, C, HW)
    if nsub * 128 != HW:
        # TODO(synk): this pad is a full HBM copy; feed spatial sizes with
        # H*W % 128 == 0 upstream to keep the kernel a single streaming pass.
        pad = ((0, 0), (0, 0), (0, nsub * 128 - HW))
        pred = jnp.pad(pred, pad)
        true = jnp.pad(true, pad)
    pred = pred.reshape(B, C, nsub, 128)        # free contiguous reshape
    true = true.reshape(B, C, nsub, 128)

    if nsub <= max_sub_tile:
        sub_tile = nsub                          # block == full spatial extent
    else:
        sub_tile = max(8, (max_sub_tile // 8) * 8)
    ns = pl.cdiv(nsub, sub_tile)
    need_mask = (HW % (sub_tile * 128)) != 0     # ragged tail / partial last tile
    group_rows = 8 if sub_tile % 8 == 0 else sub_tile

    kernel = functools.partial(
        _loss_stats_kernel, num_classes=C, sub_tile=sub_tile,
        group_rows=group_rows, hw=HW, need_mask=need_mask)

    grid_spec = pltpu.PrefetchScalarGridSpec(
        num_scalar_prefetch=0,
        grid=(B, ns),
        in_specs=[pl.BlockSpec((1, C, sub_tile, 128), lambda b, s: (b, 0, s, 0)),
                  pl.BlockSpec((1, C, sub_tile, 128), lambda b, s: (b, 0, s, 0))],
        out_specs=pl.BlockSpec((1, _N_STAT_ROWS, 128), lambda b, s: (b, 0, 0)),
        scratch_shapes=[pltpu.VMEM((5, C, group_rows, 128), jnp.float32),
                        pltpu.VMEM((4, group_rows, 128), jnp.float32)],
    )

    n_elem = B * C * HW
    cost = pl.CostEstimate(
        flops=60 * n_elem, transcendentals=5 * n_elem,
        bytes_accessed=2 * B * C * nsub * 128 * 4 + B * _N_STAT_ROWS * 128 * 4)

    stats = pl.pallas_call(
        kernel,
        out_shape=jax.ShapeDtypeStruct((B, _N_STAT_ROWS, 128), jnp.float32),
        grid_spec=grid_spec,
        compiler_params=pltpu.CompilerParams(
            dimension_semantics=("parallel", "arbitrary")),
        cost_estimate=cost,
    )(pred, true)

    # ---- tiny epilogue: O(B * 24) scalars ----
    per = jnp.sum(stats, axis=-1)                            # (B, 24)
    pred_sig = per[:, _ROW_PRED_SIG:_ROW_PRED_SIG + C]
    pred_raw = per[:, _ROW_PRED_RAW:_ROW_PRED_RAW + C]
    true_s = per[:, _ROW_TRUE:_ROW_TRUE + C]
    inter_sig = per[:, _ROW_INTER_SIG:_ROW_INTER_SIG + C]
    inter_raw = per[:, _ROW_INTER_RAW:_ROW_INTER_RAW + C]
    use_sig = jnp.sum(per[:, _ROW_OOR]) > 0.0                # min < 0 or max > 1

    pred_s = jnp.where(use_sig, pred_sig, pred_raw)
    inter = jnp.where(use_sig, inter_sig, inter_raw)
    dice = (2.0 * inter + SMOOTH) / (pred_s + true_s + SMOOTH)
    dloss = 1.0 - dice
    cls = jnp.arange(C)[None, :]
    include = jnp.logical_and(jnp.logical_or(true_s > 0.0, pred_s > 0.0), cls != 0)
    incf = include.astype(jnp.float32)
    cnt = jnp.sum(incf)
    dice_loss = jnp.where(cnt > 0.0,
                          jnp.sum(dloss * incf) / jnp.maximum(cnt, 1.0), 0.0)
    bce_loss = jnp.sum(per[:, _ROW_BCE]) / float(B * C * HW)
    ce_loss = jnp.sum(per[:, _ROW_WNLL]) / jnp.sum(per[:, _ROW_WSUM])
    return DICE_W * dice_loss + BCE_W * bce_loss + FOCAL_W * ce_loss


def reference_loss(y_pred, y_true):
    """Pure-JAX transcription of the PyTorch forward, for verification."""
    B, C, H, W = y_pred.shape
    probs = jnp.where(jnp.logical_or(jnp.min(y_pred) < 0, jnp.max(y_pred) > 1),
                      jax.nn.sigmoid(y_pred), y_pred)
    losses, masks = [], []
    for b in range(B):
        for c in range(1, C):
            p = probs[b, c].reshape(-1)
            t = y_true[b, c].reshape(-1)
            inter = jnp.sum(p * t)
            dice = (2.0 * inter + SMOOTH) / (jnp.sum(p) + jnp.sum(t) + SMOOTH)
            losses.append(1.0 - dice)
            masks.append(jnp.logical_or(jnp.sum(t) > 0, jnp.sum(p) > 0))
    losses = jnp.stack(losses)
    masks = jnp.stack(masks).astype(jnp.float32)
    cnt = jnp.sum(masks)
    dice_loss = jnp.where(cnt > 0, jnp.sum(losses * masks) / jnp.maximum(cnt, 1.0), 0.0)

    pos_weight = jnp.ones((4,), jnp.float32).at[1:].set(5.0)
    log_sig = jax.nn.log_sigmoid(y_pred)
    log_1m = jax.nn.log_sigmoid(-y_pred)
    bce = jnp.mean(-(pos_weight * y_true * log_sig + (1.0 - y_true) * log_1m))

    cw = jnp.array(CLASS_WEIGHTS, jnp.float32)
    target = jnp.argmax(y_true, axis=1)                      # (B, H, W)
    logp = jax.nn.log_softmax(y_pred, axis=1)
    nll = -jnp.take_along_axis(logp, target[:, None], axis=1)[:, 0]
    w = cw[target]
    ce = jnp.sum(w * nll) / jnp.sum(w)

    return DICE_W * dice_loss + BCE_W * bce + FOCAL_W * ce


if __name__ == "__main__":
    def run_case(key, B, C, H, W, *, unit_range=False, max_sub_tile=64):
        k1, k2 = jax.random.split(key)
        if unit_range:
            y_pred = jax.random.uniform(k1, (B, C, H, W), jnp.float32)
        else:
            y_pred = jax.random.normal(k1, (B, C, H, W), jnp.float32)
        labels = jax.random.randint(k2, (B, H, W), 0, C)
        y_true = jax.nn.one_hot(labels, C, axis=1, dtype=jnp.float32)
        loss = brats_combined_loss(y_pred, y_true, max_sub_tile=max_sub_tile)
        jax.block_until_ready(loss)
        ref = reference_loss(y_pred, y_true)
        assert jnp.allclose(loss, ref, rtol=1e-4, atol=1e-4), \
            (B, C, H, W, float(loss), float(ref))
        return loss

    keys = jax.random.split(jax.random.PRNGKey(0), 5)
    run_case(keys[0], 2, 4, 64, 4)                        # single tile, no mask
    run_case(keys[1], 2, 4, 512, 4, max_sub_tile=8)       # 2 full spatial tiles
    run_case(keys[2], 2, 4, 320, 4, max_sub_tile=8)       # partial last tile (masked)
    run_case(keys[3], 2, 4, 16, 4)                        # HW < 128: pad + mask path
    run_case(keys[4], 2, 4, 64, 4, unit_range=True)       # raw-prob (no sigmoid) path
    print("KERNEL_OK")
</pallas_src>

<mosaic_0001>
module attributes {stable_mosaic.version = 11 : i64} {
  func.func @_loss_stats_kernel(%arg0: i32, %arg1: i32, %arg2: memref<1x4x2x128xf32, #tpu.memory_space<vmem>>, %arg3: memref<1x4x2x128xf32, #tpu.memory_space<vmem>>, %arg4: memref<1x24x128xf32, #tpu.memory_space<vmem>>, %arg5: memref<5x4x2x128xf32, #tpu.memory_space<vmem>>, %arg6: memref<4x2x128xf32, #tpu.memory_space<vmem>>) attributes {dimension_semantics = [#tpu.dimension_semantics<parallel>, #tpu.dimension_semantics<arbitrary>], iteration_bounds = array<i64: 2, 1>, scalar_prefetch = 0 : i64, scratch_operands = 2 : i64, tpu.core_type = #tpu.core_type<tc>, window_params = [{transform_indices = @transform_0, window_bounds = array<i64: 1, 4, 2, 128>}, {transform_indices = @transform_1, window_bounds = array<i64: 1, 4, 2, 128>}, {transform_indices = @transform_2, window_bounds = array<i64: 1, 24, 128>}]} {
    %c0_i32 = arith.constant 0 : i32
    %0 = arith.cmpi eq, %arg1, %c0_i32 : i32
    %1 = arith.extui %0 : i1 to i32
    %c0_i32_0 = arith.constant 0 : i32
    %2 = arith.cmpi ne, %1, %c0_i32_0 : i32
    scf.if %2 {
      %cst_108 = arith.constant 0.000000e+00 : f32
      %186 = vector.broadcast %cst_108 : f32 to vector<5x4x2x128xf32>
      %c0_109 = arith.constant 0 : index
      %c0_110 = arith.constant 0 : index
      %c0_111 = arith.constant 0 : index
      %c0_112 = arith.constant 0 : index
      %187 = vector.load %arg5[%c0_109, %c0_110, %c0_111, %c0_112] : memref<5x4x2x128xf32, #tpu.memory_space<vmem>>, vector<5x4x2x128xf32>
      tpu.vector_store %arg5[%c0_109, %c0_110, %c0_111, %c0_112], %186 {strides = array<i32>} : memref<5x4x2x128xf32, #tpu.memory_space<vmem>>, vector<5x4x2x128xf32>,
      %cst_113 = arith.constant 0.000000e+00 : f32
      %188 = vector.broadcast %cst_113 : f32 to vector<4x2x128xf32>
      %c0_114 = arith.constant 0 : index
      %c0_115 = arith.constant 0 : index
      %c0_116 = arith.constant 0 : index
      %189 = vector.load %arg6[%c0_114, %c0_115, %c0_116] : memref<4x2x128xf32, #tpu.memory_space<vmem>>, vector<4x2x128xf32>
      tpu.vector_store %arg6[%c0_114, %c0_115, %c0_116], %188 {strides = array<i32>} : memref<4x2x128xf32, #tpu.memory_space<vmem>>, vector<4x2x128xf32>,
    } else {
    }
    %c0 = arith.constant 0 : index
    %c0_1 = arith.constant 0 : index
    %c0_2 = arith.constant 0 : index
    %c0_3 = arith.constant 0 : index
    %3 = vector.load %arg2[%c0, %c0_1, %c0_2, %c0_3] : memref<1x4x2x128xf32, #tpu.memory_space<vmem>>, vector<1x4x2x128xf32>
    %4 = vector.shape_cast %3 : vector<1x4x2x128xf32> to vector<4x2x128xf32>
    %c0_4 = arith.constant 0 : index
    %c0_5 = arith.constant 0 : index
    %c0_6 = arith.constant 0 : index
    %c0_7 = arith.constant 0 : index
    %5 = vector.load %arg3[%c0_4, %c0_5, %c0_6, %c0_7] : memref<1x4x2x128xf32, #tpu.memory_space<vmem>>, vector<1x4x2x128xf32>
    %6 = vector.shape_cast %5 : vector<1x4x2x128xf32> to vector<4x2x128xf32>
    %7 = tpu.iota {dimensions = array<i32: 1>} : vector<2x128xi32>
    %8 = math.absf %4 : vector<4x2x128xf32>
    %cst = arith.constant 0.000000e+00 : f32
    %9 = vector.broadcast %cst : f32 to vector<4x2x128xf32>
    %10 = arith.subf %9, %8 : vector<4x2x128xf32>
    %11 = math.exp %10 : vector<4x2x128xf32>
    %cst_8 = arith.constant 1.000000e+00 : f32
    %12 = vector.broadcast %cst_8 : f32 to vector<4x2x128xf32>
    %13 = arith.addf %12, %11 : vector<4x2x128xf32>
    %14 = math.log %13 : vector<4x2x128xf32>
    %cst_9 = arith.constant 1.000000e+00 : f32
    %15 = vector.broadcast %cst_9 : f32 to vector<4x2x128xf32>
    %16 = arith.addf %15, %11 : vector<4x2x128xf32>
    %17 = tpu.reciprocal %16 {approx = true} : vector<4x2x128xf32> -> vector<4x2x128xf32>
    %18 = arith.mulf %16, %17 : vector<4x2x128xf32>
    %cst_10 = arith.constant 2.000000e+00 : f32
    %19 = vector.broadcast %cst_10 : f32 to vector<4x2x128xf32>
    %20 = arith.subf %19, %18 : vector<4x2x128xf32>
    %21 = arith.mulf %17, %20 : vector<4x2x128xf32>
    %cst_11 = arith.constant 0.000000e+00 : f32
    %22 = vector.broadcast %cst_11 : f32 to vector<4x2x128xf32>
    %23 = arith.cmpf oge, %4, %22 : vector<4x2x128xf32>
    %24 = arith.mulf %11, %21 : vector<4x2x128xf32>
    %25 = arith.select %23, %21, %24 : vector<4x2x128xi1>, vector<4x2x128xf32>
    %cst_12 = arith.constant 0.000000e+00 : f32
    %26 = vector.broadcast %cst_12 : f32 to vector<4x2x128xf32>
    %27 = arith.subf %26, %4 : vector<4x2x128xf32>
    %cst_13 = arith.constant 0.000000e+00 : f32
    %28 = vector.broadcast %cst_13 : f32 to vector<4x2x128xf32>
    %29 = arith.maximumf %27, %28 : vector<4x2x128xf32>
    %30 = arith.addf %29, %14 : vector<4x2x128xf32>
    %cst_14 = arith.constant 0.000000e+00 : f32
    %31 = vector.broadcast %cst_14 : f32 to vector<4x2x128xf32>
    %32 = arith.subf %31, %30 : vector<4x2x128xf32>
    %cst_15 = arith.constant 0.000000e+00 : f32
    %33 = vector.broadcast %cst_15 : f32 to vector<4x2x128xf32>
    %34 = arith.maximumf %4, %33 : vector<4x2x128xf32>
    %35 = arith.addf %34, %14 : vector<4x2x128xf32>
    %cst_16 = arith.constant 0.000000e+00 : f32
    %36 = vector.broadcast %cst_16 : f32 to vector<4x2x128xf32>
    %37 = arith.subf %36, %35 : vector<4x2x128xf32>
    %c0_17 = arith.constant 0 : index
    %c0_18 = arith.constant 0 : index
    %c0_19 = arith.constant 0 : index
    %c0_20 = arith.constant 0 : index
    %38 = vector.load %arg5[%c0_17, %c0_18, %c0_19, %c0_20] : memref<5x4x2x128xf32, #tpu.memory_space<vmem>>, vector<1x4x2x128xf32>
    %39 = vector.shape_cast %38 : vector<1x4x2x128xf32> to vector<4x2x128xf32>
    %40 = arith.addf %39, %25 : vector<4x2x128xf32>
    %c0_21 = arith.constant 0 : index
    %c0_22 = arith.constant 0 : index
    %c0_23 = arith.constant 0 : index
    %c0_24 = arith.constant 0 : index
    %41 = vector.load %arg5[%c0_21, %c0_22, %c0_23, %c0_24] : memref<5x4x2x128xf32, #tpu.memory_space<vmem>>, vector<1x4x2x128xf32>
    %42 = vector.shape_cast %41 : vector<1x4x2x128xf32> to vector<4x2x128xf32>
    %43 = vector.shape_cast %40 : vector<4x2x128xf32> to vector<1x4x2x128xf32>
    tpu.vector_store %arg5[%c0_21, %c0_22, %c0_23, %c0_24], %43 {strides = array<i32>} : memref<5x4x2x128xf32, #tpu.memory_space<vmem>>, vector<1x4x2x128xf32>,
    %c1 = arith.constant 1 : index
    %c0_25 = arith.constant 0 : index
    %c0_26 = arith.constant 0 : index
    %c0_27 = arith.constant 0 : index
    %44 = vector.load %arg5[%c1, %c0_25, %c0_26, %c0_27] : memref<5x4x2x128xf32, #tpu.memory_space<vmem>>, vector<1x4x2x128xf32>
    %45 = vector.shape_cast %44 : vector<1x4x2x128xf32> to vector<4x2x128xf32>
    %46 = arith.addf %45, %4 : vector<4x2x128xf32>
    %c1_28 = arith.constant 1 : index
    %c0_29 = arith.constant 0 : index
    %c0_30 = arith.constant 0 : index
    %c0_31 = arith.constant 0 : index
    %47 = vector.load %arg5[%c1_28, %c0_29, %c0_30, %c0_31] : memref<5x4x2x128xf32, #tpu.memory_space<vmem>>, vector<1x4x2x128xf32>
    %48 = vector.shape_cast %47 : vector<1x4x2x128xf32> to vector<4x2x128xf32>
    %49 = vector.shape_cast %46 : vector<4x2x128xf32> to vector<1x4x2x128xf32>
    tpu.vector_store %arg5[%c1_28, %c0_29, %c0_30, %c0_31], %49 {strides = array<i32>} : memref<5x4x2x128xf32, #tpu.memory_space<vmem>>, vector<1x4x2x128xf32>,
    %c2 = arith.constant 2 : index
    %c0_32 = arith.constant 0 : index
    %c0_33 = arith.constant 0 : index
    %c0_34 = arith.constant 0 : index
    %50 = vector.load %arg5[%c2, %c0_32, %c0_33, %c0_34] : memref<5x4x2x128xf32, #tpu.memory_space<vmem>>, vector<1x4x2x128xf32>
    %51 = vector.shape_cast %50 : vector<1x4x2x128xf32> to vector<4x2x128xf32>
    %52 = arith.addf %51, %6 : vector<4x2x128xf32>
    %c2_35 = arith.constant 2 : index
    %c0_36 = arith.constant 0 : index
    %c0_37 = arith.constant 0 : index
    %c0_38 = arith.constant 0 : index
    %53 = vector.load %arg5[%c2_35, %c0_36, %c0_37, %c0_38] : memref<5x4x2x128xf32, #tpu.memory_space<vmem>>, vector<1x4x2x128xf32>
    %54 = vector.shape_cast %53 : vector<1x4x2x128xf32> to vector<4x2x128xf32>
    %55 = vector.shape_cast %52 : vector<4x2x128xf32> to vector<1x4x2x128xf32>
    tpu.vector_store %arg5[%c2_35, %c0_36, %c0_37, %c0_38], %55 {strides = array<i32>} : memref<5x4x2x128xf32, #tpu.memory_space<vmem>>, vector<1x4x2x128xf32>,
    %c3 = arith.constant 3 : index
    %c0_39 = arith.constant 0 : index
    %c0_40 = arith.constant 0 : index
    %c0_41 = arith.constant 0 : index
    %56 = vector.load %arg5[%c3, %c0_39, %c0_40, %c0_41] : memref<5x4x2x128xf32, #tpu.memory_space<vmem>>, vector<1x4x2x128xf32>
    %57 = vector.shape_cast %56 : vector<1x4x2x128xf32> to vector<4x2x128xf32>
    %58 = arith.mulf %25, %6 : vector<4x2x128xf32>
    %59 = arith.addf %57, %58 : vector<4x2x128xf32>
    %c3_42 = arith.constant 3 : index
    %c0_43 = arith.constant 0 : index
    %c0_44 = arith.constant 0 : index
    %c0_45 = arith.constant 0 : index
    %60 = vector.load %arg5[%c3_42, %c0_43, %c0_44, %c0_45] : memref<5x4x2x128xf32, #tpu.memory_space<vmem>>, vector<1x4x2x128xf32>
    %61 = vector.shape_cast %60 : vector<1x4x2x128xf32> to vector<4x2x128xf32>
    %62 = vector.shape_cast %59 : vector<4x2x128xf32> to vector<1x4x2x128xf32>
    tpu.vector_store %arg5[%c3_42, %c0_43, %c0_44, %c0_45], %62 {strides = array<i32>} : memref<5x4x2x128xf32, #tpu.memory_space<vmem>>, vector<1x4x2x128xf32>,
    %c4 = arith.constant 4 : index
    %c0_46 = arith.constant 0 : index
    %c0_47 = arith.constant 0 : index
    %c0_48 = arith.constant 0 : index
    %63 = vector.load %arg5[%c4, %c0_46, %c0_47, %c0_48] : memref<5x4x2x128xf32, #tpu.memory_space<vmem>>, vector<1x4x2x128xf32>
    %64 = vector.shape_cast %63 : vector<1x4x2x128xf32> to vector<4x2x128xf32>
    %65 = arith.mulf %4, %6 : vector<4x2x128xf32>
    %66 = arith.addf %64, %65 : vector<4x2x128xf32>
    %c4_49 = arith.constant 4 : index
    %c0_50 = arith.constant 0 : index
    %c0_51 = arith.constant 0 : index
    %c0_52 = arith.constant 0 : index
    %67 = vector.load %arg5[%c4_49, %c0_50, %c0_51, %c0_52] : memref<5x4x2x128xf32, #tpu.memory_space<vmem>>, vector<1x4x2x128xf32>
    %68 = vector.shape_cast %67 : vector<1x4x2x128xf32> to vector<4x2x128xf32>
    %69 = vector.shape_cast %66 : vector<4x2x128xf32> to vector<1x4x2x128xf32>
    tpu.vector_store %arg5[%c4_49, %c0_50, %c0_51, %c0_52], %69 {strides = array<i32>} : memref<5x4x2x128xf32, #tpu.memory_space<vmem>>, vector<1x4x2x128xf32>,
    %c3_i32 = arith.constant 3 : i32
    %70 = vector.broadcast %c3_i32 : i32 to vector<2x128xi32>
    %71 = arith.andi %7, %70 : vector<2x128xi32>
    %c0_i32_53 = arith.constant 0 : i32
    %72 = vector.broadcast %c0_i32_53 : i32 to vector<2x128xi32>
    %73 = arith.cmpi eq, %71, %72 : vector<2x128xi32>
    %cst_54 = arith.constant 1.000000e+00 : f32
    %cst_55 = arith.constant 5.000000e+00 : f32
    %74 = vector.broadcast %cst_54 : f32 to vector<2x128xf32>
    %75 = vector.broadcast %cst_55 : f32 to vector<2x128xf32>
    %76 = arith.select %73, %74, %75 : vector<2x128xi1>, vector<2x128xf32>
    %77 = vector.shape_cast %76 : vector<2x128xf32> to vector<1x2x128xf32>
    %78 = vector.broadcast %77 : vector<1x2x128xf32> to vector<4x2x128xf32>
    %79 = arith.mulf %78, %6 : vector<4x2x128xf32>
    %80 = arith.mulf %79, %32 : vector<4x2x128xf32>
    %cst_56 = arith.constant 1.000000e+00 : f32
    %81 = vector.broadcast %cst_56 : f32 to vector<4x2x128xf32>
    %82 = arith.subf %81, %6 : vector<4x2x128xf32>
    %83 = arith.mulf %82, %37 : vector<4x2x128xf32>
    %84 = arith.addf %80, %83 : vector<4x2x128xf32>
    %cst_57 = arith.constant 0.000000e+00 : f32
    %85 = vector.broadcast %cst_57 : f32 to vector<4x2x128xf32>
    %86 = arith.subf %85, %84 : vector<4x2x128xf32>
    %cst_58 = arith.constant dense<0.000000e+00> : vector<2x128xf32>
    %87 = vector.multi_reduction <add>, %86, %cst_58 [0] : vector<4x2x128xf32> to vector<2x128xf32>
    %c0_59 = arith.constant 0 : index
    %c0_60 = arith.constant 0 : index
    %c0_61 = arith.constant 0 : index
    %88 = vector.load %arg6[%c0_59, %c0_60, %c0_61] : memref<4x2x128xf32, #tpu.memory_space<vmem>>, vector<1x2x128xf32>
    %89 = vector.shape_cast %88 : vector<1x2x128xf32> to vector<2x128xf32>
    %90 = arith.addf %89, %87 : vector<2x128xf32>
    %c0_62 = arith.constant 0 : index
    %c0_63 = arith.constant 0 : index
    %c0_64 = arith.constant 0 : index
    %91 = vector.load %arg6[%c0_62, %c0_63, %c0_64] : memref<4x2x128xf32, #tpu.memory_space<vmem>>, vector<1x2x128xf32>
    %92 = vector.shape_cast %91 : vector<1x2x128xf32> to vector<2x128xf32>
    %93 = vector.shape_cast %90 : vector<2x128xf32> to vector<1x2x128xf32>
    tpu.vector_store %arg6[%c0_62, %c0_63, %c0_64], %93 {strides = array<i32>} : memref<4x2x128xf32, #tpu.memory_space<vmem>>, vector<1x2x128xf32>,
    %cst_65 = arith.constant dense<0xFF800000> : vector<2x128xf32>
    %94 = vector.multi_reduction <maximumf>, %4, %cst_65 [0] : vector<4x2x128xf32> to vector<2x128xf32>
    %95 = vector.shape_cast %94 : vector<2x128xf32> to vector<1x2x128xf32>
    %96 = vector.broadcast %95 : vector<1x2x128xf32> to vector<4x2x128xf32>
    %97 = arith.subf %4, %96 : vector<4x2x128xf32>
    %98 = math.exp %97 : vector<4x2x128xf32>
    %cst_66 = arith.constant dense<0.000000e+00> : vector<2x128xf32>
    %99 = vector.multi_reduction <add>, %98, %cst_66 [0] : vector<4x2x128xf32> to vector<2x128xf32>
    %100 = math.log %99 : vector<2x128xf32>
    %101 = arith.addf %94, %100 : vector<2x128xf32>
    %cst_67 = arith.constant dense<0xFF800000> : vector<2x128xf32>
    %102 = vector.multi_reduction <maximumf>, %6, %cst_67 [0] : vector<4x2x128xf32> to vector<2x128xf32>
    %cst_68 = arith.constant 4.000000e+00 : f32
    %103 = vector.broadcast %cst_68 : f32 to vector<2x128xf32>
    %104 = vector.extract_strided_slice %6 {offsets = [3, 0, 0], sizes = [1, 2, 128], strides = [1, 1, 1]} : vector<4x2x128xf32> to vector<1x2x128xf32>
    %105 = vector.shape_cast %104 : vector<1x2x128xf32> to vector<2x128xf32>
    %106 = arith.cmpf oeq, %105, %102 : vector<2x128xf32>
    %cst_69 = arith.constant 3.000000e+00 : f32
    %107 = vector.broadcast %cst_69 : f32 to vector<2x128xf32>
    %108 = arith.select %106, %107, %103 : vector<2x128xi1>, vector<2x128xf32>
    %109 = vector.extract_strided_slice %6 {offsets = [2, 0, 0], sizes = [1, 2, 128], strides = [1, 1, 1]} : vector<4x2x128xf32> to vector<1x2x128xf32>
    %110 = vector.shape_cast %109 : vector<1x2x128xf32> to vector<2x128xf32>
    %111 = arith.cmpf oeq, %110, %102 : vector<2x128xf32>
    %cst_70 = arith.constant 2.000000e+00 : f32
    %112 = vector.broadcast %cst_70 : f32 to vector<2x128xf32>
    %113 = arith.select %111, %112, %108 : vector<2x128xi1>, vector<2x128xf32>
    %114 = vector.extract_strided_slice %6 {offsets = [1, 0, 0], sizes = [1, 2, 128], strides = [1, 1, 1]} : vector<4x2x128xf32> to vector<1x2x128xf32>
    %115 = vector.shape_cast %114 : vector<1x2x128xf32> to vector<2x128xf32>
    %116 = arith.cmpf oeq, %115, %102 : vector<2x128xf32>
    %cst_71 = arith.constant 1.000000e+00 : f32
    %117 = vector.broadcast %cst_71 : f32 to vector<2x128xf32>
    %118 = arith.select %116, %117, %113 : vector<2x128xi1>, vector<2x128xf32>
    %119 = vector.extract_strided_slice %6 {offsets = [0, 0, 0], sizes = [1, 2, 128], strides = [1, 1, 1]} : vector<4x2x128xf32> to vector<1x2x128xf32>
    %120 = vector.shape_cast %119 : vector<1x2x128xf32> to vector<2x128xf32>
    %121 = arith.cmpf oeq, %120, %102 : vector<2x128xf32>
    %cst_72 = arith.constant 0.000000e+00 : f32
    %122 = vector.broadcast %cst_72 : f32 to vector<2x128xf32>
    %123 = arith.select %121, %122, %118 : vector<2x128xi1>, vector<2x128xf32>
    %cst_73 = arith.constant 0.000000e+00 : f32
    %124 = vector.broadcast %cst_73 : f32 to vector<2x128xf32>
    %cst_74 = arith.constant 0.000000e+00 : f32
    %125 = vector.broadcast %cst_74 : f32 to vector<2x128xf32>
    %cst_75 = arith.constant 0.000000e+00 : f32
    %126 = vector.broadcast %cst_75 : f32 to vector<2x128xf32>
    %127 = arith.cmpf oeq, %123, %126 : vector<2x128xf32>
    %128 = vector.extract_strided_slice %4 {offsets = [0, 0, 0], sizes = [1, 2, 128], strides = [1, 1, 1]} : vector<4x2x128xf32> to vector<1x2x128xf32>
    %129 = vector.shape_cast %128 : vector<1x2x128xf32> to vector<2x128xf32>
    %130 = arith.select %127, %129, %124 : vector<2x128xi1>, vector<2x128xf32>
    %cst_76 = arith.constant 1.000000e-01 : f32
    %131 = vector.broadcast %cst_76 : f32 to vector<2x128xf32>
    %132 = arith.select %127, %131, %125 : vector<2x128xi1>, vector<2x128xf32>
    %cst_77 = arith.constant 1.000000e+00 : f32
    %133 = vector.broadcast %cst_77 : f32 to vector<2x128xf32>
    %134 = arith.cmpf oeq, %123, %133 : vector<2x128xf32>
    %135 = vector.extract_strided_slice %4 {offsets = [1, 0, 0], sizes = [1, 2, 128], strides = [1, 1, 1]} : vector<4x2x128xf32> to vector<1x2x128xf32>
    %136 = vector.shape_cast %135 : vector<1x2x128xf32> to vector<2x128xf32>
    %137 = arith.select %134, %136, %130 : vector<2x128xi1>, vector<2x128xf32>
    %cst_78 = arith.constant 1.000000e+00 : f32
    %138 = vector.broadcast %cst_78 : f32 to vector<2x128xf32>
    %139 = arith.select %134, %138, %132 : vector<2x128xi1>, vector<2x128xf32>
    %cst_79 = arith.constant 2.000000e+00 : f32
    %140 = vector.broadcast %cst_79 : f32 to vector<2x128xf32>
    %141 = arith.cmpf oeq, %123, %140 : vector<2x128xf32>
    %142 = vector.extract_strided_slice %4 {offsets = [2, 0, 0], sizes = [1, 2, 128], strides = [1, 1, 1]} : vector<4x2x128xf32> to vector<1x2x128xf32>
    %143 = vector.shape_cast %142 : vector<1x2x128xf32> to vector<2x128xf32>
    %144 = arith.select %141, %143, %137 : vector<2x128xi1>, vector<2x128xf32>
    %cst_80 = arith.constant 1.000000e+00 : f32
    %145 = vector.broadcast %cst_80 : f32 to vector<2x128xf32>
    %146 = arith.select %141, %145, %139 : vector<2x128xi1>, vector<2x128xf32>
    %cst_81 = arith.constant 3.000000e+00 : f32
    %147 = vector.broadcast %cst_81 : f32 to vector<2x128xf32>
    %148 = arith.cmpf oeq, %123, %147 : vector<2x128xf32>
    %149 = vector.extract_strided_slice %4 {offsets = [3, 0, 0], sizes = [1, 2, 128], strides = [1, 1, 1]} : vector<4x2x128xf32> to vector<1x2x128xf32>
    %150 = vector.shape_cast %149 : vector<1x2x128xf32> to vector<2x128xf32>
    %151 = arith.select %148, %150, %144 : vector<2x128xi1>, vector<2x128xf32>
    %cst_82 = arith.constant 1.200000e+00 : f32
    %152 = vector.broadcast %cst_82 : f32 to vector<2x128xf32>
    %153 = arith.select %148, %152, %146 : vector<2x128xi1>, vector<2x128xf32>
    %c1_83 = arith.constant 1 : index
    %c0_84 = arith.constant 0 : index
    %c0_85 = arith.constant 0 : index
    %154 = vector.load %arg6[%c1_83, %c0_84, %c0_85] : memref<4x2x128xf32, #tpu.memory_space<vmem>>, vector<1x2x128xf32>
    %155 = vector.shape_cast %154 : vector<1x2x128xf32> to vector<2x128xf32>
    %156 = arith.subf %101, %151 : vector<2x128xf32>
    %157 = arith.mulf %153, %156 : vector<2x128xf32>
    %158 = arith.addf %155, %157 : vector<2x128xf32>
    %c1_86 = arith.constant 1 : index
    %c0_87 = arith.constant 0 : index
    %c0_88 = arith.constant 0 : index
    %159 = vector.load %arg6[%c1_86, %c0_87, %c0_88] : memref<4x2x128xf32, #tpu.memory_space<vmem>>, vector<1x2x128xf32>
    %160 = vector.shape_cast %159 : vector<1x2x128xf32> to vector<2x128xf32>
    %161 = vector.shape_cast %158 : vector<2x128xf32> to vector<1x2x128xf32>
    tpu.vector_store %arg6[%c1_86, %c0_87, %c0_88], %161 {strides = array<i32>} : memref<4x2x128xf32, #tpu.memory_space<vmem>>, vector<1x2x128xf32>,
    %c2_89 = arith.constant 2 : index
    %c0_90 = arith.constant 0 : index
    %c0_91 = arith.constant 0 : index
    %162 = vector.load %arg6[%c2_89, %c0_90, %c0_91] : memref<4x2x128xf32, #tpu.memory_space<vmem>>, vector<1x2x128xf32>
    %163 = vector.shape_cast %162 : vector<1x2x128xf32> to vector<2x128xf32>
    %164 = arith.addf %163, %153 : vector<2x128xf32>
    %c2_92 = arith.constant 2 : index
    %c0_93 = arith.constant 0 : index
    %c0_94 = arith.constant 0 : index
    %165 = vector.load %arg6[%c2_92, %c0_93, %c0_94] : memref<4x2x128xf32, #tpu.memory_space<vmem>>, vector<1x2x128xf32>
    %166 = vector.shape_cast %165 : vector<1x2x128xf32> to vector<2x128xf32>
    %167 = vector.shape_cast %164 : vector<2x128xf32> to vector<1x2x128xf32>
    tpu.vector_store %arg6[%c2_92, %c0_93, %c0_94], %167 {strides = array<i32>} : memref<4x2x128xf32, #tpu.memory_space<vmem>>, vector<1x2x128xf32>,
    %cst_95 = arith.constant 0.000000e+00 : f32
    %168 = vector.broadcast %cst_95 : f32 to vector<4x2x128xf32>
    %169 = arith.cmpf olt, %4, %168 : vector<4x2x128xf32>
    %cst_96 = arith.constant 1.000000e+00 : f32
    %170 = vector.broadcast %cst_96 : f32 to vector<4x2x128xf32>
    %171 = arith.cmpf ogt, %4, %170 : vector<4x2x128xf32>
    %172 = arith.ori %169, %171 : vector<4x2x128xi1>
    %cst_97 = arith.constant 1.000000e+00 : f32
    %cst_98 = arith.constant 0.000000e+00 : f32
    %173 = vector.broadcast %cst_97 : f32 to vector<4x2x128xf32>
    %174 = vector.broadcast %cst_98 : f32 to vector<4x2x128xf32>
    %175 = arith.select %172, %173, %174 : vector<4x2x128xi1>, vector<4x2x128xf32>
    %cst_99 = arith.constant dense<0xFF800000> : vector<2x128xf32>
    %176 = vector.multi_reduction <maximumf>, %175, %cst_99 [0] : vector<4x2x128xf32> to vector<2x128xf32>
    %c3_100 = arith.constant 3 : index
    %c0_101 = arith.constant 0 : index
    %c0_102 = arith.constant 0 : index
    %177 = vector.load %arg6[%c3_100, %c0_101, %c0_102] : memref<4x2x128xf32, #tpu.memory_space<vmem>>, vector<1x2x128xf32>
    %178 = vector.shape_cast %177 : vector<1x2x128xf32> to vector<2x128xf32>
    %179 = arith.maximumf %178, %176 : vector<2x128xf32>
    %c3_103 = arith.constant 3 : index
    %c0_104 = arith.constant 0 : index
    %c0_105 = arith.constant 0 : index
    %180 = vector.load %arg6[%c3_103, %c0_104, %c0_105] : memref<4x2x128xf32, #tpu.memory_space<vmem>>, vector<1x2x128xf32>
    %181 = vector.shape_cast %180 : vector<1x2x128xf32> to vector<2x128xf32>
    %182 = vector.shape_cast %179 : vector<2x128xf32> to vector<1x2x128xf32>
    tpu.vector_store %arg6[%c3_103, %c0_104, %c0_105], %182 {strides = array<i32>} : memref<4x2x128xf32, #tpu.memory_space<vmem>>, vector<1x2x128xf32>,
    %c0_i32_106 = arith.constant 0 : i32
    %183 = arith.cmpi eq, %arg1, %c0_i32_106 : i32
    %184 = arith.extui %183 : i1 to i32
    %c0_i32_107 = arith.constant 0 : i32
    %185 = arith.cmpi ne, %184, %c0_i32_107 : i32
    scf.if %185 {
      %c0_108 = arith.constant 0 : index
      %c0_109 = arith.constant 0 : index
      %c0_110 = arith.constant 0 : index
      %c0_111 = arith.constant 0 : index
      %186 = vector.load %arg5[%c0_108, %c0_109, %c0_110, %c0_111] : memref<5x4x2x128xf32, #tpu.memory_space<vmem>>, vector<1x4x2x128xf32>
      %187 = vector.shape_cast %186 : vector<1x4x2x128xf32> to vector<4x2x128xf32>
      %cst_112 = arith.constant dense<0.000000e+00> : vector<4x128xf32>
      %188 = vector.multi_reduction <add>, %187, %cst_112 [1] : vector<4x2x128xf32> to vector<4x128xf32>
      %c0_113 = arith.constant 0 : index
      %c0_114 = arith.constant 0 : index
      %c0_115 = arith.constant 0 : index
      %189 = vector.load %arg4[%c0_113, %c0_114, %c0_115] : memref<1x24x128xf32, #tpu.memory_space<vmem>>, vector<1x4x128xf32>
      %190 = vector.shape_cast %189 : vector<1x4x128xf32> to vector<4x128xf32>
      %191 = vector.shape_cast %188 : vector<4x128xf32> to vector<1x4x128xf32>
      tpu.vector_store %arg4[%c0_113, %c0_114, %c0_115], %191 {strides = array<i32>} : memref<1x24x128xf32, #tpu.memory_space<vmem>>, vector<1x4x128xf32>,
      %c1_116 = arith.constant 1 : index
      %c0_117 = arith.constant 0 : index
      %c0_118 = arith.constant 0 : index
      %c0_119 = arith.constant 0 : index
      %192 = vector.load %arg5[%c1_116, %c0_117, %c0_118, %c0_119] : memref<5x4x2x128xf32, #tpu.memory_space<vmem>>, vector<1x4x2x128xf32>
      %193 = vector.shape_cast %192 : vector<1x4x2x128xf32> to vector<4x2x128xf32>
      %cst_120 = arith.constant dense<0.000000e+00> : vector<4x128xf32>
      %194 = vector.multi_reduction <add>, %193, %cst_120 [1] : vector<4x2x128xf32> to vector<4x128xf32>
      %c0_121 = arith.constant 0 : index
      %c4_122 = arith.constant 4 : index
      %c0_123 = arith.constant 0 : index
      %195 = vector.load %arg4[%c0_121, %c4_122, %c0_123] : memref<1x24x128xf32, #tpu.memory_space<vmem>>, vector<1x4x128xf32>
      %196 = vector.shape_cast %195 : vector<1x4x128xf32> to vector<4x128xf32>
      %197 = vector.shape_cast %194 : vector<4x128xf32> to vector<1x4x128xf32>
      tpu.vector_store %arg4[%c0_121, %c4_122, %c0_123], %197 {strides = array<i32>} : memref<1x24x128xf32, #tpu.memory_space<vmem>>, vector<1x4x128xf32>,
      %c2_124 = arith.constant 2 : index
      %c0_125 = arith.constant 0 : index
      %c0_126 = arith.constant 0 : index
      %c0_127 = arith.constant 0 : index
      %198 = vector.load %arg5[%c2_124, %c0_125, %c0_126, %c0_127] : memref<5x4x2x128xf32, #tpu.memory_space<vmem>>, vector<1x4x2x128xf32>
      %199 = vector.shape_cast %198 : vector<1x4x2x128xf32> to vector<4x2x128xf32>
      %cst_128 = arith.constant dense<0.000000e+00> : vector<4x128xf32>
      %200 = vector.multi_reduction <add>, %199, %cst_128 [1] : vector<4x2x128xf32> to vector<4x128xf32>
      %c0_129 = arith.constant 0 : index
      %c8 = arith.constant 8 : index
      %c0_130 = arith.constant 0 : index
      %201 = vector.load %arg4[%c0_129, %c8, %c0_130] : memref<1x24x128xf32, #tpu.memory_space<vmem>>, vector<1x4x128xf32>
      %202 = vector.shape_cast %201 : vector<1x4x128xf32> to vector<4x128xf32>
      %203 = vector.shape_cast %200 : vector<4x128xf32> to vector<1x4x128xf32>
      tpu.vector_store %arg4[%c0_129, %c8, %c0_130], %203 {strides = array<i32>} : memref<1x24x128xf32, #tpu.memory_space<vmem>>, vector<1x4x128xf32>,
      %c3_131 = arith.constant 3 : index
      %c0_132 = arith.constant 0 : index
      %c0_133 = arith.constant 0 : index
      %c0_134 = arith.constant 0 : index
      %204 = vector.load %arg5[%c3_131, %c0_132, %c0_133, %c0_134] : memref<5x4x2x128xf32, #tpu.memory_space<vmem>>, vector<1x4x2x128xf32>
      %205 = vector.shape_cast %204 : vector<1x4x2x128xf32> to vector<4x2x128xf32>
      %cst_135 = arith.constant dense<0.000000e+00> : vector<4x128xf32>
      %206 = vector.multi_reduction <add>, %205, %cst_135 [1] : vector<4x2x128xf32> to vector<4x128xf32>
      %c0_136 = arith.constant 0 : index
      %c12 = arith.constant 12 : index
      %c0_137 = arith.constant 0 : index
      %207 = vector.load %arg4[%c0_136, %c12, %c0_137] : memref<1x24x128xf32, #tpu.memory_space<vmem>>, vector<1x4x128xf32>
      %208 = vector.shape_cast %207 : vector<1x4x128xf32> to vector<4x128xf32>
      %209 = vector.shape_cast %206 : vector<4x128xf32> to vector<1x4x128xf32>
      tpu.vector_store %arg4[%c0_136, %c12, %c0_137], %209 {strides = array<i32>} : memref<1x24x128xf32, #tpu.memory_space<vmem>>, vector<1x4x128xf32>,
      %c4_138 = arith.constant 4 : index
      %c0_139 = arith.constant 0 : index
      %c0_140 = arith.constant 0 : index
      %c0_141 = arith.constant 0 : index
      %210 = vector.load %arg5[%c4_138, %c0_139, %c0_140, %c0_141] : memref<5x4x2x128xf32, #tpu.memory_space<vmem>>, vector<1x4x2x128xf32>
      %211 = vector.shape_cast %210 : vector<1x4x2x128xf32> to vector<4x2x128xf32>
      %cst_142 = arith.constant dense<0.000000e+00> : vector<4x128xf32>
      %212 = vector.multi_reduction <add>, %211, %cst_142 [1] : vector<4x2x128xf32> to vector<4x128xf32>
      %c0_143 = arith.constant 0 : index
      %c16 = arith.constant 16 : index
      %c0_144 = arith.constant 0 : index
      %213 = vector.load %arg4[%c0_143, %c16, %c0_144] : memref<1x24x128xf32, #tpu.memory_space<vmem>>, vector<1x4x128xf32>
      %214 = vector.shape_cast %213 : vector<1x4x128xf32> to vector<4x128xf32>
      %215 = vector.shape_cast %212 : vector<4x128xf32> to vector<1x4x128xf32>
      tpu.vector_store %arg4[%c0_143, %c16, %c0_144], %215 {strides = array<i32>} : memref<1x24x128xf32, #tpu.memory_space<vmem>>, vector<1x4x128xf32>,
      %c0_145 = arith.constant 0 : index
      %c0_146 = arith.constant 0 : index
      %c0_147 = arith.constant 0 : index
      %216 = vector.load %arg6[%c0_145, %c0_146, %c0_147] : memref<4x2x128xf32, #tpu.memory_space<vmem>>, vector<1x2x128xf32>
      %217 = vector.shape_cast %216 : vector<1x2x128xf32> to vector<2x128xf32>
      %cst_148 = arith.constant dense<0.000000e+00> : vector<128xf32>
      %218 = vector.multi_reduction <add>, %217, %cst_148 [0] : vector<2x128xf32> to vector<128xf32>
      %219 = vector.shape_cast %218 : vector<128xf32> to vector<1x128xf32>
      %c0_149 = arith.constant 0 : index
      %c20 = arith.constant 20 : index
      %c0_150 = arith.constant 0 : index
      %220 = vector.load %arg4[%c0_149, %c20, %c0_150] : memref<1x24x128xf32, #tpu.memory_space<vmem>>, vector<1x1x128xf32>
      %221 = vector.shape_cast %220 : vector<1x1x128xf32> to vector<1x128xf32>
      %222 = vector.shape_cast %219 : vector<1x128xf32> to vector<1x1x128xf32>
      tpu.vector_store %arg4[%c0_149, %c20, %c0_150], %222 {strides = array<i32>} : memref<1x24x128xf32, #tpu.memory_space<vmem>>, vector<1x1x128xf32>,
      %c1_151 = arith.constant 1 : index
      %c0_152 = arith.constant 0 : index
      %c0_153 = arith.constant 0 : index
      %223 = vector.load %arg6[%c1_151, %c0_152, %c0_153] : memref<4x2x128xf32, #tpu.memory_space<vmem>>, vector<1x2x128xf32>
      %224 = vector.shape_cast %223 : vector<1x2x128xf32> to vector<2x128xf32>
      %cst_154 = arith.constant dense<0.000000e+00> : vector<128xf32>
      %225 = vector.multi_reduction <add>, %224, %cst_154 [0] : vector<2x128xf32> to vector<128xf32>
      %226 = vector.shape_cast %225 : vector<128xf32> to vector<1x128xf32>
      %c0_155 = arith.constant 0 : index
      %c21 = arith.constant 21 : index
      %c0_156 = arith.constant 0 : index
      %227 = vector.load %arg4[%c0_155, %c21, %c0_156] : memref<1x24x128xf32, #tpu.memory_space<vmem>>, vector<1x1x128xf32>
      %228 = vector.shape_cast %227 : vector<1x1x128xf32> to vector<1x128xf32>
      %229 = vector.shape_cast %226 : vector<1x128xf32> to vector<1x1x128xf32>
      tpu.vector_store %arg4[%c0_155, %c21, %c0_156], %229 {strides = array<i32>} : memref<1x24x128xf32, #tpu.memory_space<vmem>>, vector<1x1x128xf32>,
      %c2_157 = arith.constant 2 : index
      %c0_158 = arith.constant 0 : index
      %c0_159 = arith.constant 0 : index
      %230 = vector.load %arg6[%c2_157, %c0_158, %c0_159] : memref<4x2x128xf32, #tpu.memory_space<vmem>>, vector<1x2x128xf32>
      %231 = vector.shape_cast %230 : vector<1x2x128xf32> to vector<2x128xf32>
      %cst_160 = arith.constant dense<0.000000e+00> : vector<128xf32>
      %232 = vector.multi_reduction <add>, %231, %cst_160 [0] : vector<2x128xf32> to vector<128xf32>
      %233 = vector.shape_cast %232 : vector<128xf32> to vector<1x128xf32>
      %c0_161 = arith.constant 0 : index
      %c22 = arith.constant 22 : index
      %c0_162 = arith.constant 0 : index
      %234 = vector.load %arg4[%c0_161, %c22, %c0_162] : memref<1x24x128xf32, #tpu.memory_space<vmem>>, vector<1x1x128xf32>
      %235 = vector.shape_cast %234 : vector<1x1x128xf32> to vector<1x128xf32>
      %236 = vector.shape_cast %233 : vector<1x128xf32> to vector<1x1x128xf32>
      tpu.vector_store %arg4[%c0_161, %c22, %c0_162], %236 {strides = array<i32>} : memref<1x24x128xf32, #tpu.memory_space<vmem>>, vector<1x1x128xf32>,
      %c3_163 = arith.constant 3 : index
      %c0_164 = arith.constant 0 : index
      %c0_165 = arith.constant 0 : index
      %237 = vector.load %arg6[%c3_163, %c0_164, %c0_165] : memref<4x2x128xf32, #tpu.memory_space<vmem>>, vector<1x2x128xf32>
      %238 = vector.shape_cast %237 : vector<1x2x128xf32> to vector<2x128xf32>
      %cst_166 = arith.constant dense<0xFF800000> : vector<128xf32>
      %239 = vector.multi_reduction <maximumf>, %238, %cst_166 [0] : vector<2x128xf32> to vector<128xf32>
      %240 = vector.shape_cast %239 : vector<128xf32> to vector<1x128xf32>
      %c0_167 = arith.constant 0 : index
      %c23 = arith.constant 23 : index
      %c0_168 = arith.constant 0 : index
      %241 = vector.load %arg4[%c0_167, %c23, %c0_168] : memref<1x24x128xf32, #tpu.memory_space<vmem>>, vector<1x1x128xf32>
      %242 = vector.shape_cast %241 : vector<1x1x128xf32> to vector<1x128xf32>
      %243 = vector.shape_cast %240 : vector<1x128xf32> to vector<1x1x128xf32>
      tpu.vector_store %arg4[%c0_167, %c23, %c0_168], %243 {strides = array<i32>} : memref<1x24x128xf32, #tpu.memory_space<vmem>>, vector<1x1x128xf32>,
    } else {
    }
    return
  }
  func.func @transform_0(%arg0: i32, %arg1: i32) -> (i32, i32, i32, i32) {
    %c0_i32 = arith.constant 0 : i32
    %c0_i32_0 = arith.constant 0 : i32
    %c0_i32_1 = arith.constant 0 : i32
    return %arg0, %c0_i32, %arg1, %c0_i32_0 : i32, i32, i32, i32
  }
  func.func @transform_1(%arg0: i32, %arg1: i32) -> (i32, i32, i32, i32) {
    %c0_i32 = arith.constant 0 : i32
    %c0_i32_0 = arith.constant 0 : i32
    %c0_i32_1 = arith.constant 0 : i32
    return %arg0, %c0_i32, %arg1, %c0_i32_0 : i32, i32, i32, i32
  }
  func.func @transform_2(%arg0: i32, %arg1: i32) -> (i32, i32, i32) {
    %c0_i32 = arith.constant 0 : i32
    %c0_i32_0 = arith.constant 0 : i32
    %c0_i32_1 = arith.constant 0 : i32
    return %arg0, %c0_i32, %c0_i32_0 : i32, i32, i32
  }
}

</mosaic_0001>

<bundles_post_ra>
// kernel: tpu_custom_call.1
= control target key start
LH: loop header
LB: loop body
LE: loop exit
PB: predicated region body
PF: predicated region fallthrough
CT: control target
= control target key end

     0   :  { %7 = vsyncpa [#allocation5], 0  ;;  %s1656_s0 = inlined_call_operand.hbm [shape: f32[2,4,2,128], index: 0, kind: input, shape index: {}]   ;;  %s1657_s1 = inlined_call_operand.hbm [shape: f32[2,4,2,128], index: 1, kind: input, shape index: {}]   ;;  %s1658_s2 = inlined_call_operand.hbm [shape: f32[2,24,128], index: 2, kind: output, shape index: {}]  }
   0x1   :  { %9 = vsyncpa [#allocation5 + $0x1], 0 }
   0x2   :  { %10 = vsyncpa [#allocation8], 0 }
   0x3   :  { %12 = vsyncpa [#allocation8 + $0x1], 0 }
   0x4   :  { %13 = vsyncpa [#allocation6], 0 }
   0x5   :  { %15 = vsyncpa [#allocation6 + $0x1], 0  ;;  %s1218_s9 = smov 0   ;;  %s1220_s10 = smov 0  }
   0x6   :  { %s1222_s11 = smov 0   ;;  %s1224_s12 = smov 0  }
   0x7   :  { %s1226_s13 = smov 0   ;;  %s1228_s14 = smov 0  }
   0x8 LB: > { %s920_s15 = sadd.s32 4294967295, %s1194_s14   ;;  %s921_s16 = sadd.s32 4294967294, %s1194_s14   ;;  %s1194_s14 = sphi %s1228_s14, %s21_s14   ;;  %s1190_s13 = sphi %s1226_s13, %s1671_s13   ;;  %s1186_s12 = sphi %s1224_s12, %s1670_s12   ;;  %s1182_s11 = sphi %s1222_s11, %s1669_s11   ;;  %s1178_s10 = sphi %s1220_s10, %s1668_s10   ;;  %s1174_s9 = sphi %s1218_s9, %s1667_s9  }
   0x9   : > { %s33_s17 = sadd.s32 1, %s1190_s13  ;;  %s42_s18 = sadd.s32 1, %s1182_s11 }
   0xa   : > { %p35_p0 = scmp.ge.s32.totalorder %s33_s17, 2  ;;  %p49_p1 = scmp.ne.s32.totalorder %s1182_s11, %s1178_s10 }
   0xb   : > { %p50_p2 = scmp.eq.s32.totalorder %s1194_s14, 0  ;;  %p55_p3 = scmp.ne.s32.totalorder %s1178_s10, %s1174_s9 }
   0xc   : > { %s1673_s17 = smov (%p35_p0, %s33_s17), 0  ;;  %p56_p5 = scmp.eq.s32.totalorder %s920_s15, 0 }
   0xd   : > { %p1259_p4 = por %p50_p2, %p49_p1  ;;  %s37_s20 = ssub.s32 %s1190_s13, %s1673_s17 }
   0xe   : > { %p107_p6 = scmp.eq.s32.totalorder %s920_s15, 1  ;;  %p40_p7 = scmp.eq.s32.totalorder %s37_s20, 0 }
   0xf   : > { %p1265_p8 = por %p56_p5, %p55_p3  ;;  %p113_p10 = scmp.eq.s32.totalorder %s921_s16, 1 }
  0x10   : > { %p1269_p9 = por %p107_p6, %p49_p1  ;;  %p923_p12 = scmp.ge.s32.totalorder %s1194_s14, 2 }
  0x11   : > { %s1274_s23 = scalar_select %p40_p7, %s1182_s11, %s42_s18  }
  0x12   : > { %p1276_p11 = por %p113_p10, %p55_p3  ;;  %p957_p13 = scmp.lt.s32.totalorder %s1194_s14, 2 }
  0x13   : > { %s1283_s25 = sand.u32 1, %s1182_s11   ;;  %s936_s27 = sshll.u32 %s1190_s13, 3 }
  0x14   : > { %s924_s26 = sshll.u32 %s1283_s25, 3  ;;  %s143_s30 = scalar_lea.hbm %s1656_s0, %s936_s27 }
  0x15   : > { %s137_s3 = scalar_lea.vmem [#allocation4], %s924_s26  ;;  %s144_s5 = sshll.u32 %s143_s30, 4  ;;  %s145_s5 = int_to_ptr.hbm [resolvable:$true] %s144_s5 }
  0x16   : > { %s146_s4 = sshll.u32 %s137_s3, 4  ;;  %p1292_p0 = pnand %p957_p13, %p1259_p4  ;;  %s147_s4 = int_to_ptr.vmem [resolvable:$true] %s146_s4 }
  0x17   : > { %p930_p1 = scmp.ge.s32.totalorder %s1194_s14, 1  ;;  %s134_s7 = scalar_lea.sflag [#allocation5], %s1283_s25 }
  0x18   : > { %s1196_s8 = smov 32   ;;  %s1197_s15 = smov 2  }
  0x19   : > { %949 = dma.hbm_to_vmem [thread:$0]  (!%p1292_p0), %s145_s5, 128, %s147_s4, %s134_s7, %s1196_s8, %s1196_s8, %s1197_s15  }
  0x1a   : > { %p177_p2 = scmp.lt.s32.totalorder %s1194_s14, 3  ;;  %s166_s20 = scalar_lea.hbm %s1657_s1, %s936_s27 }
  0x1b   : > { %s167_s28 = sshll.u32 %s166_s20, 4  ;;  %s160_s19 = scalar_lea.vmem [#allocation7], %s924_s26  ;;  %s168_s28 = int_to_ptr.hbm [resolvable:$true] %s167_s28 }
  0x1c   : > { %p178_p3 = pnand %p930_p1, %p177_p2  ;;  %s169_s29 = sshll.u32 %s160_s19, 4  ;;  %s170_s29 = int_to_ptr.vmem [resolvable:$true] %s169_s29 }
  0x1d   : > { %s157_s30 = scalar_lea.sflag [#allocation8], %s1283_s25  ;;  %s1308_s3 = sand.u32 (!%p178_p3), 1, %s1178_s10  }
  0x1e   : > { %952 = dma.hbm_to_vmem [thread:$0]  (!%p1292_p0), %s168_s28, 128, %s170_s29, %s157_s30, %s1196_s8, %s1196_s8, %s1197_s15  }
  0x1f   : > { %181 = sbr.rel (%p178_p3) target bundleno = 162 (0xa2), region = 28  ;;  %s931_s4 = sshll.u32 (!%p178_p3), %s1308_s3, 3 }
  0x20   : > { %s184_s5 = scalar_lea.sflag (!%p178_p3), [#allocation5], %s1308_s3  ;;  %s1312_s7 = scalar_lea.vmem (!%p178_p3), [#allocation4], %s931_s4 }
  0x24   : > { %1161 = dma.done.wait (%p1265_p8), %s184_s5, 128  }
  0x25   : > { %1163 = vsyncadd (%p1265_p8), %s184_s5, 4294967168  ;;  %s194_s25 = scalar_lea.sflag [#allocation8], %s1308_s3  ;;  %s1319_s26 = scalar_lea.vmem [#allocation7], %s931_s4 }
  0x26   : > { %1165 = dma.done.wait (%p1265_p8), %s194_s25, 128  }
  0x27   : > { %1167 = vsyncadd (%p1265_p8), %s194_s25, 4294967168  ;;  %v1198_v0 = vmov 0.0   ;;  %v1333_v1 = vld [vmem:[%s1312_s7] sm:$0x3]  ;;  %v1336_v2 = vld [vmem:[%s1312_s7 + $0x2] sm:$0x3] }
  0x28   : > { %228 = vst [vmem:[#allocation2] sm:$0x3] %v1198_v0  ;;  %v262_v3 = vand.u32 2147483647, %v1333_v1  ;;  %v263_v4 = vand.u32 2147483647, %v1336_v2 }
  0x29   : > { %229 = vst [vmem:[#allocation2 + $0x2] sm:$0x3] %v1198_v0  ;;  %v1348_v9 = vld [vmem:[%s1312_s7 + $0x4] sm:$0x3]  ;;  %vm445_vm0 = vcmask 1041408   ;;  %vm306_vm1 = vcmp.ge.f32.partialorder %v1333_v1, 0.0 }
  0x2a   : > { %230 = vst [vmem:[#allocation2 + $0x4] sm:$0x3] %v1198_v0  ;;  %v266_v5 = vsub.f32 0.0, %v262_v3  ;;  %v267_v6 = vsub.f32 0.0, %v263_v4  ;;  %v264_v10 = vand.u32 2147483647, %v1348_v9 }
  0x2b   : > { %231 = vst [vmem:[#allocation2 + $0x6] sm:$0x3] %v1198_v0  ;;  %v1356_v13 = vsel %vm445_vm0, %v1333_v1, -inf  ;;  %v1360_v15 = vld [vmem:[%s1319_s26] sm:$0x3]  ;;  %v1391_v32 = vsel %vm445_vm0, %v1336_v2, -inf }
  0x2c   : > { %232 = vst [vmem:[#allocation2 + $0x8] sm:$0x3] %v1198_v0  ;;  %v270_v7 = vmul.f32 1.442695, %v266_v5  ;;  %v272_v8 = vmul.f32 1.442695, %v267_v6  ;;  %v406_v25 = vmul.f32 %v1360_v15, %v1333_v1  ;;  %v460_v44 = vmax.f32 %v1356_v13, %v1391_v32 }
  0x2d   : > { %233 = vst [vmem:[#allocation2 + $0xa] sm:$0x3] %v1198_v0  ;;  %v268_v12 = vsub.f32 0.0, %v264_v10  ;;  %v1363_v16 = vld [vmem:[%s1319_s26 + $0x2] sm:$0x3]  ;;  %v485_v35 = vsel %vm445_vm0, %v1360_v15, -inf }
  0x2e   : > { %234 = vst [vmem:[#allocation2 + $0xc] sm:$0x3] %v1198_v0  ;;  %1014 = vpow2.f32 %v270_v7  ;;  %v1370_v21 = vld [vmem:[%s1312_s7 + $0x6] sm:$0x3]  ;;  %v407_v29 = vmul.f32 %v1363_v16, %v1336_v2  ;;  %v1387_v30 = vld [vmem:[%s1319_s26 + $0x4] sm:$0x3] }
  0x2f   : > { %235 = vst [vmem:[#allocation2 + $0xe] sm:$0x3] %v1198_v0  ;;  %1016 = vpow2.f32 %v272_v8  ;;  %v274_v18 = vmul.f32 1.442695, %v268_v12  ;;  %v265_v34 = vand.u32 2147483647, %v1370_v21  ;;  %v408_v42 = vmul.f32 %v1387_v30, %v1348_v9 }
  0x30   : > { %236 = vst [vmem:[#allocation2 + $0x10] sm:$0x3] %v1198_v0  ;;  %v486_v36 = vsel %vm445_vm0, %v1363_v16, -inf  ;;  %v1410_v49 = vld [vmem:[%s1319_s26 + $0x6] sm:$0x3]  ;;  %v487_v57 = vsel %vm445_vm0, %v1387_v30, -inf }
  0x31   : > { %237 = vst [vmem:[#allocation2 + $0x12] sm:$0x3] %v1198_v0  ;;  %1018 = vpow2.f32 %v274_v18  ;;  %v269_v43 = vsub.f32 0.0, %v265_v34  ;;  %v409_v53 = vmul.f32 %v1410_v49, %v1370_v21  ;;  %v489_v54 = vmax.f32 %v485_v35, %v486_v36  ;;  %s938_s21 = smul.u32 24, %s1308_s3  ;;  %s797_s20 = scalar_lea.sflag [#allocation6], %s1308_s3 }
  0x32   : > { %238 = vst [vmem:[#allocation2 + $0x14] sm:$0x3] %v1198_v0  ;;  %v488_v61 = vsel %vm445_vm0, %v1410_v49, -inf  ;;  %vm522_vm3 = vcmp.lt.f32.partialorder %v1333_v1, 0.0  ;;  %vm523_vm4 = vcmp.lt.f32.partialorder %v1336_v2, 0.0  ;;  %vm524_vm5 = vcmp.lt.f32.partialorder %v1348_v9, 0.0 }
  0x33   : > { %239 = vst [vmem:[#allocation2 + $0x16] sm:$0x3] %v1198_v0  ;;  %v359_v11 = vld [vmem:[#allocation2 + $0x8] sm:$0x3]  ;;  %v276_v51 = vmul.f32 1.442695, %v269_v43  ;;  %v490_v63 = vmax.f32 %v487_v57, %v488_v61 }
  0x34   : > { %240 = vst [vmem:[#allocation2 + $0x18] sm:$0x3] %v1198_v0  ;;  %v360_v14 = vld [vmem:[#allocation2 + $0xa] sm:$0x3]  ;;  %v1366_v19 = vpop.eup %1014  ;;  %v363_v24 = vadd.f32 %v359_v11, %v1333_v1  ;;  %vm526_vm6 = vcmp.gt.f32.partialorder %v1333_v1, 1.0  ;;  %vm527_vm7 = vcmp.gt.f32.partialorder %v1336_v2, 1.0 }
  0x35   : > { %241 = vst [vmem:[#allocation2 + $0x1a] sm:$0x3] %v1198_v0  ;;  %v1372_v22 = vpop.eup %1016  ;;  %v278_v23 = vadd.f32 1.0, %v1366_v19  ;;  %v361_v26 = vld [vmem:[#allocation2 + $0xc] sm:$0x3]  ;;  %v364_v28 = vadd.f32 %v360_v14, %v1336_v2  ;;  %v491_v6 = vmax.f32 %v489_v54, %v490_v63  ;;  %vm528_vm8 = vcmp.gt.f32.partialorder %v1348_v9, 1.0  ;;  %vm1442_vm11 = vmor %vm522_vm3, %vm526_vm6 }
  0x36   : > { %242 = vst [vmem:[#allocation2 + $0x1c] sm:$0x3] %v1198_v0  ;;  %v1381_v27 = vadd.f32 1.0, %v1372_v22  ;;  %v362_v39 = vld [vmem:[#allocation2 + $0xe] sm:$0x3]  ;;  %v365_v46 = vadd.f32 %v361_v26, %v1348_v9  ;;  %vm525_vm9 = vcmp.lt.f32.partialorder %v1370_v21, 0.0  ;;  %vm531_vm3 = vmor %vm523_vm4, %vm527_vm7 }
  0x37   : > { %243 = vst [vmem:[#allocation2 + $0x1e] sm:$0x3] %v1198_v0  ;;  %v372_v17 = vld [vmem:[#allocation2 + $0x10] sm:$0x3]  ;;  %1020 = vrcp.f32 %v278_v23  ;;  %v1412_v50 = vpop.eup %1018  ;;  %v366_v56 = vadd.f32 %v362_v39, %v1370_v21  ;;  %vm529_vm10 = vcmp.gt.f32.partialorder %v1370_v21, 1.0  ;;  %vm308_vm12 = vcmp.ge.f32.partialorder %v1348_v9, 0.0  ;;  %vm532_vm6 = vmor %vm524_vm5, %vm528_vm8 }
  0x38   : > { %244 = vst [vmem:[#allocation2 + $0x20] sm:$0x3] %v1198_v0  ;;  %v373_v20 = vld [vmem:[#allocation2 + $0x12] sm:$0x3]  ;;  %v376_v33 = vadd.f32 %v372_v17, %v1360_v15  ;;  %1022 = vrcp.f32 %v1381_v27  ;;  %v1419_v55 = vadd.f32 1.0, %v1412_v50  ;;  %vm492_vm13 = vcmp.eq.f32.partialorder %v1410_v49, %v491_v6  ;;  %vm533_vm4 = vmor %vm525_vm9, %vm529_vm10  ;;  %s1580_s27 = scalar_lea.vmem [#allocation9], %s938_s21 }
  0x39   : > { %245 = vst [vmem:[#allocation2 + $0x22] sm:$0x3] %v1198_v0  ;;  %v374_v31 = vld [vmem:[#allocation2 + $0x14] sm:$0x3]  ;;  %v377_v37 = vadd.f32 %v373_v20, %v1363_v16  ;;  %1024 = vlog2.f32 %v278_v23  ;;  %vm494_vm14 = vcmp.eq.f32.partialorder %v1387_v30, %v491_v6  ;;  %vm496_vm15 = vcmp.eq.f32.partialorder %v1363_v16, %v491_v6  ;;  %s939_s6 = smul.u32 24, %s1186_s12  ;;  %s809_s12 = sshll.u32 %s1580_s27, 4  ;;  %s810_s12 = int_to_ptr.vmem [resolvable:$true] %s809_s12 }
  0x3a   : > { %246 = vst [vmem:[#allocation2 + $0x24] sm:$0x3] %v1198_v0  ;;  %v378_v47 = vadd.f32 %v374_v31, %v1387_v30  ;;  %v375_v52 = vld [vmem:[#allocation2 + $0x16] sm:$0x3]  ;;  %1026 = vlog2.f32 %v1381_v27  ;;  %vm498_vm2 = vcmp.eq.f32.partialorder %v1360_v15, %v491_v6  ;;  %v1199_v20 = vmov 4.0   ;;  %s1128_s4 = scalar_lea.hbm %s1658_s2, 48 }
  0x3b   : > { %247 = vst [vmem:[#allocation2 + $0x26] sm:$0x3] %v1198_v0  ;;  %1028 = vpow2.f32 %v276_v51  ;;  %v379_v59 = vadd.f32 %v375_v52, %v1410_v49  ;;  %v385_v43 = vld [vmem:[#allocation2 + $0x18] sm:$0x3]  ;;  %vm309_vm8 = vcmp.ge.f32.partialorder %v1370_v21, 0.0  ;;  %s808_s16 = scalar_lea.hbm %s1658_s2, %s939_s6 }
  0x3c   : > { %248 = vst [vmem:[#allocation3] sm:$0x3] %v1198_v0  ;;  %1030 = vrcp.f32 %v1419_v55  ;;  %s811_s18 = sshll.u32 %s808_s16, 4  ;;  %s812_s18 = int_to_ptr.hbm [resolvable:$true] %s811_s18 }
  0x3d   : > { %249 = vst [vmem:[#allocation3 + $0x2] sm:$0x3] %v1198_v0  ;;  %v1021_v62 = vpop.eup %1020  ;;  %s1122_s28 = sshra.s32 %s812_s18, 4  ;;  %s1123_s28 = int_to_ptr.hbm [resolvable:$true] %s1122_s28 }
  0x3e   : > { %250 = vst [vmem:[#allocation3 + $0x4] sm:$0x3] %v1198_v0  ;;  %v294_v3 = vmul.f32 %v1021_v62, %v278_v23  ;;  %v1023_v5 = vpop.eup %1022  ;;  %v493_v23 = vsel %vm492_vm13, 3.0, %v1199_v20  ;;  %vm592_vm13 = vcmask 1043459   ;;  %s1124_s19 = scalar_lea.hbm %s1123_s28, 24  ;;  %p1129_p7 = scmp.lt.s32.totalorder %s1123_s28, %s1658_s2 }
  0x3f   : > { %251 = vst [vmem:[#allocation3 + $0x6] sm:$0x3] %v1198_v0  ;;  %v402_v38 = vld [vmem:[#allocation2 + $0x20] sm:$0x3]  ;;  %v1435_v7 = vpop.eup %1024  ;;  %v295_v10 = vmul.f32 %v1023_v5, %v1381_v27  ;;  %v495_v27 = vsel %vm494_vm14, 2.0, %v493_v23  ;;  %p1125_p4 = scmp.ne.s32.totalorder %s1123_s28, %s1124_s19  ;;  %p1130_p8 = scmp.lt.s32.totalorder %s1128_s4, %s1124_s19 }
  0x40   : > { %367 = vst [vmem:[#allocation2 + $0x8] sm:$0x3] %v363_v24  ;;  %v410_v40 = vadd.f32 %v406_v25, %v402_v38  ;;  %v403_v41 = vld [vmem:[#allocation2 + $0x22] sm:$0x3]  ;;  %v298_v8 = vsub.f32 2.0, %v294_v3  ;;  %v1446_v12 = vpop.eup %1026  ;;  %v534_v24 = vsel %vm1442_vm11, 1.0, %v1198_v0 }
  0x41   : > { %368 = vst [vmem:[#allocation2 + $0xa] sm:$0x3] %v364_v28  ;;  %v411_v45 = vadd.f32 %v407_v29, %v403_v41  ;;  %v404_v48 = vld [vmem:[#allocation2 + $0x24] sm:$0x3]  ;;  %v1457_v14 = vpop.eup %1028  ;;  %v299_v18 = vsub.f32 2.0, %v295_v10  ;;  %v535_v28 = vsel %vm531_vm3, 1.0, %v1198_v0  ;;  %p1126_p5 = pnand %p1125_p4, %p1269_p9  ;;  %p1131_p10 = por %p1130_p8, %p1129_p7 }
  0x42   : > { %380 = vst [vmem:[#allocation2 + $0x10] sm:$0x3] %v376_v33  ;;  %v412_v58 = vadd.f32 %v408_v42, %v404_v48  ;;  %v405_v60 = vld [vmem:[#allocation2 + $0x26] sm:$0x3]  ;;  %v302_v17 = vmul.f32 %v1021_v62, %v298_v8  ;;  %v1031_v25 = vpop.eup %1030  ;;  %v1467_v26 = vadd.f32 1.0, %v1457_v14  ;;  %v536_v29 = vsel %vm532_vm6, 1.0, %v1198_v0 }
  0x43   : > { %381 = vst [vmem:[#allocation2 + $0x12] sm:$0x3] %v377_v37  ;;  %v413_v4 = vadd.f32 %v409_v53, %v405_v60  ;;  %v346_v33 = vld [vmem:[#allocation2] sm:$0x3]  ;;  %v303_v34 = vmul.f32 %v1023_v5, %v299_v18  ;;  %v296_v35 = vmul.f32 %v1031_v25, %v1419_v55  ;;  %v497_v36 = vsel %vm496_vm15, 1.0, %v495_v27  ;;  %p1127_p6 = pneg %p1126_p5 }
  0x44   : > { %414 = vst [vmem:[#allocation2 + $0x20] sm:$0x3] %v410_v40  ;;  %v310_v31 = vmul.f32 %v1366_v19, %v302_v17  ;;  %1032 = vrcp.f32 %v1467_v26  ;;  %v499_v37 = vsel %vm498_vm2, 0.0, %v497_v36  ;;  %v537_v38 = vsel %vm533_vm4, 1.0, %v1198_v0  ;;  %v347_v41 = vld [vmem:[#allocation2 + $0x2] sm:$0x3] }
  0x45   : > { %415 = vst [vmem:[#allocation2 + $0x22] sm:$0x3] %v411_v45  ;;  %v538_v39 = vsel %vm445_vm0, %v534_v24, -inf  ;;  %v311_v19 = vmul.f32 %v1372_v22, %v303_v34  ;;  %v300_v42 = vsub.f32 2.0, %v296_v35  ;;  %vm500_vm5 = vcmp.eq.f32.partialorder %v499_v37, 0.0  ;;  %p1132_p13 = pnand %p1131_p10, %p1127_p6 }
  0x46   : > { %369 = vst [vmem:[#allocation2 + $0xc] sm:$0x3] %v365_v46  ;;  %v314_v40 = vsel %vm306_vm1, %v302_v17, %v310_v31  ;;  %v502_v48 = vsel %vm500_vm5, 0.1, %v1198_v0  ;;  %vm1666_vm2 = vcmp.ge.f32.partialorder %v1336_v2, 0.0  ;;  %vm503_vm7 = vcmp.eq.f32.partialorder %v499_v37, 1.0 }
  0x47   : > { %382 = vst [vmem:[#allocation2 + $0x14] sm:$0x3] %v378_v47  ;;  %v350_v45 = vadd.f32 %v346_v33, %v314_v40  ;;  %v389_v46 = vmul.f32 %v314_v40, %v1360_v15  ;;  %v501_v47 = vsel %vm500_vm5, %v1333_v1, 0.0  ;;  %v315_v51 = vsel %vm1666_vm2, %v303_v34, %v311_v19  ;;  %v386_v53 = vld [vmem:[#allocation2 + $0x1a] sm:$0x3] }
  0x48   : > { %416 = vst [vmem:[#allocation2 + $0x24] sm:$0x3] %v412_v58  ;;  %v304_v52 = vmul.f32 %v1031_v25, %v300_v42  ;;  %vm506_vm1 = vcmp.eq.f32.partialorder %v499_v37, 2.0  ;;  %v351_v22 = vadd.f32 %v347_v41, %v315_v51  ;;  %v504_v57 = vsel %vm503_vm7, %v1336_v2, %v501_v47  ;;  %v519_v61 = vld [vmem:[#allocation3 + $0x4] sm:$0x3] }
  0x49   : > { %370 = vst [vmem:[#allocation2 + $0xe] sm:$0x3] %v366_v56  ;;  %v393_v54 = vadd.f32 %v389_v46, %v385_v43  ;;  %v390_v56 = vmul.f32 %v315_v51, %v1363_v16  ;;  %v505_v0 = vsel %vm503_vm7, 1.0, %v502_v48  ;;  %v507_v60 = vsel %vm506_vm1, %v1348_v9, %v504_v57  ;;  %v387_v3 = vld [vmem:[#allocation2 + $0x1c] sm:$0x3] }
  0x4a   : > { %383 = vst [vmem:[#allocation2 + $0x16] sm:$0x3] %v379_v59  ;;  %v312_v58 = vmul.f32 %v1412_v50, %v304_v52  ;;  %v348_v59 = vld [vmem:[#allocation2 + $0x4] sm:$0x3]  ;;  %vm509_vm9 = vcmp.eq.f32.partialorder %v499_v37, 3.0  ;;  %v1033_v62 = vpop.eup %1032  ;;  %v539_v6 = vsel %vm445_vm0, %v535_v28, -inf  ;;  %v260_v34 = vlaneseq }
  0x4b   : > { %417 = vst [vmem:[#allocation2 + $0x26] sm:$0x3] %v413_v4  ;;  %v394_v63 = vadd.f32 %v390_v56, %v386_v53  ;;  %v508_v4 = vsel %vm506_vm1, 1.0, %v505_v0  ;;  %v1500_v5 = vsel %vm509_vm9, %v1370_v21, %v507_v60  ;;  %v297_v8 = vmul.f32 %v1033_v62, %v1467_v26  ;;  %v546_v28 = vld [vmem:[#allocation3 + $0x6] sm:$0x3] }
  0x4c   : > { %354 = vst [vmem:[#allocation2] sm:$0x3] %v350_v45  ;;  %v316_v50 = vsel %vm308_vm12, %v304_v52, %v312_v58  ;;  %v1506_v10 = vsel %vm509_vm9, 1.2, %v508_v4  ;;  %v540_v11 = vsel %vm445_vm0, %v536_v29, -inf  ;;  %v541_v23 = vsel %vm445_vm0, %v537_v38, -inf }
  0x4d   : > { %355 = vst [vmem:[#allocation2 + $0x2] sm:$0x3] %v351_v22  ;;  %v352_v17 = vadd.f32 %v348_v59, %v316_v50  ;;  %v391_v18 = vmul.f32 %v316_v50, %v1387_v30  ;;  %v520_v20 = vadd.f32 %v519_v61, %v1506_v10  ;;  %v301_v24 = vsub.f32 2.0, %v297_v8  ;;  %v349_v43 = vld [vmem:[#allocation2 + $0x6] sm:$0x3] }
  0x4e   : > { %397 = vst [vmem:[#allocation2 + $0x18] sm:$0x3] %v393_v54  ;;  %v542_v25 = vmax.f32 %v538_v39, %v539_v6  ;;  %v543_v27 = vmax.f32 %v540_v11, %v541_v23  ;;  %v458_v31 = vsel %vm445_vm0, %v1348_v9, -inf  ;;  %v459_v29 = vsel %vm445_vm0, %v1370_v21, -inf  ;;  %v388_v51 = vld [vmem:[#allocation2 + $0x1e] sm:$0x3] }
  0x4f   : > { %398 = vst [vmem:[#allocation2 + $0x1a] sm:$0x3] %v394_v63  ;;  %v395_v33 = vadd.f32 %v391_v18, %v387_v3  ;;  %v283_v35 = vmul.f32 0.6931472, %v1435_v7  ;;  %v305_v36 = vmul.f32 %v1033_v62, %v301_v24  ;;  %v461_v40 = vmax.f32 %v458_v31, %v459_v29 }
  0x50   : > { %356 = vst [vmem:[#allocation2 + $0x4] sm:$0x3] %v352_v17  ;;  %v544_v37 = vmax.f32 %v542_v25, %v543_v27  ;;  %v285_v38 = vmul.f32 0.6931472, %v1446_v12  ;;  %v261_v39 = vand.u32 127, %v260_v34  ;;  %1034 = vlog2.f32 %v1419_v55 }
  0x51   : > { %521 = vst [vmem:[#allocation3 + $0x4] sm:$0x3] %v520_v20  ;;  %v318_v19 = vsub.f32 0.0, %v1333_v1  ;;  %v319_v41 = vsub.f32 0.0, %v1336_v2  ;;  %v313_v42 = vmul.f32 %v1457_v14, %v305_v36  ;;  %v1525_v7 = vmax.f32 %v460_v44, %v461_v40 }
  0x52   : > { %399 = vst [vmem:[#allocation2 + $0x1c] sm:$0x3] %v395_v33  ;;  %v547_v45 = vmax.f32 %v546_v28, %v544_v37  ;;  %1036 = vlog2.f32 %v1467_v26  ;;  %v320_v12 = vsub.f32 0.0, %v1348_v9  ;;  %v321_v46 = vsub.f32 0.0, %v1370_v21 }
  0x53   : > { %v322_v55 = vmax.f32 %v318_v19, 0.0  ;;  %v323_v47 = vmax.f32 %v319_v41, 0.0  ;;  %v317_v48 = vsel %vm309_vm8, %v305_v36, %v313_v42  ;;  %v463_v14 = vsub.f32 %v1333_v1, %v1525_v7 }
  0x54   : > { %548 = vst [vmem:[#allocation3 + $0x6] sm:$0x3] %v547_v45  ;;  %v464_v13 = vsub.f32 %v1336_v2, %v1525_v7  ;;  %v465_v32 = vsub.f32 %v1348_v9, %v1525_v7  ;;  %v353_v44 = vadd.f32 %v349_v43, %v317_v48  ;;  %v392_v26 = vmul.f32 %v317_v48, %v1410_v49 }
  0x55   : > { %v466_v52 = vsub.f32 %v1370_v21, %v1525_v7  ;;  %v324_v53 = vmax.f32 %v320_v12, 0.0  ;;  %v467_v22 = vmul.f32 1.442695, %v463_v14  ;;  %v326_v57 = vadd.f32 %v322_v55, %v283_v35  ;;  %v553_v14 = vld [vmem:[#allocation2 + $0x2] sm:$0x3] }
  0x56   : > { %v469_v54 = vmul.f32 1.442695, %v464_v13  ;;  %v471_v56 = vmul.f32 1.442695, %v465_v32  ;;  %v1035_v58 = vpop.eup %1034  ;;  %357 = vst [vmem:[#allocation2 + $0x6] sm:$0x3] %v353_v44  ;;  %v396_v59 = vadd.f32 %v392_v26, %v388_v51  ;;  %v327_v61 = vadd.f32 %v323_v47, %v285_v38 }
  0x57   : > { %v473_v0 = vmul.f32 1.442695, %v466_v52  ;;  %v325_v60 = vmax.f32 %v321_v46, 0.0  ;;  %1038 = vpow2.f32 %v467_v22  ;;  %v287_v63 = vmul.f32 0.6931472, %v1035_v58 }
  0x58   : > { %v1037_v62 = vpop.eup %1036  ;;  %v330_v3 = vsub.f32 0.0, %v326_v57  ;;  %v334_v4 = vmax.f32 %v1333_v1, 0.0  ;;  %400 = vst [vmem:[#allocation2 + $0x1e] sm:$0x3] %v396_v59  ;;  %1040 = vpow2.f32 %v469_v54  ;;  %v331_v50 = vsub.f32 0.0, %v327_v61 }
  0x59   : > { %v289_v6 = vmul.f32 0.6931472, %v1037_v62  ;;  %v335_v8 = vmax.f32 %v1336_v2, 0.0  ;;  %1042 = vpow2.f32 %v471_v56  ;;  %v328_v11 = vadd.f32 %v324_v53, %v287_v63  ;;  %v552_v51 = vld [vmem:[#allocation2] sm:$0x3] }
  0x5a   : > { %v336_v17 = vmax.f32 %v1348_v9, 0.0  ;;  %v337_v18 = vmax.f32 %v1370_v21, 0.0  ;;  %1044 = vpow2.f32 %v473_v0  ;;  %v338_v23 = vadd.f32 %v334_v4, %v283_v35 }
  0x5b   : > { %v329_v20 = vadd.f32 %v325_v60, %v289_v6  ;;  %v339_v24 = vadd.f32 %v335_v8, %v285_v38  ;;  %v332_v25 = vsub.f32 0.0, %v328_v11  ;;  %v418_v1 = vand.u32 3, %v261_v39 }
  0x5c   : > { %v340_v27 = vadd.f32 %v336_v17, %v287_v63  ;;  %v341_v28 = vadd.f32 %v337_v18, %v289_v6  ;;  %v342_v33 = vsub.f32 0.0, %v338_v23  ;;  %v429_v37 = vsub.f32 1.0, %v1360_v15 }
  0x5d   : > { %v333_v31 = vsub.f32 0.0, %v329_v20  ;;  %v343_v29 = vsub.f32 0.0, %v339_v24  ;;  %v1039_v34 = vpop.eup %1038  ;;  %vm419_vm10 = vcmp.eq.s32.totalorder %v418_v1, 0  ;;  %v1200_v40 = vmov 5.0   ;;  %v555_v62 = vld [vmem:[#allocation2 + $0x6] sm:$0x3] }
  0x5e   : > { %v344_v36 = vsub.f32 0.0, %v340_v27  ;;  %v345_v2 = vsub.f32 0.0, %v341_v28  ;;  %v1041_v9 = vpop.eup %1040  ;;  %v475_v21 = vsel %vm445_vm0, %v1039_v34, 0.0  ;;  %v420_v19 = vsel %vm419_vm10, 1.0, %v1200_v40  ;;  %v453_v40 = vld [vmem:[#allocation3] sm:$0x3] }
  0x5f   : > { %v430_v35 = vsub.f32 1.0, %v1363_v16  ;;  %v431_v38 = vsub.f32 1.0, %v1387_v30  ;;  %v1043_v41 = vpop.eup %1042  ;;  %v476_v39 = vsel %vm445_vm0, %v1041_v9, 0.0  ;;  %v421_v42 = vmul.f32 %v420_v19, %v1360_v15  ;;  %v597_v9 = vld [vmem:[#allocation2 + $0xa] sm:$0x3] }
  0x60   : > { %v422_v43 = vmul.f32 %v420_v19, %v1363_v16  ;;  %v423_v45 = vmul.f32 %v420_v19, %v1387_v30  ;;  %v1045_v12 = vpop.eup %1044  ;;  %v477_v46 = vadd.f32 %v476_v39, %v475_v21  ;;  %v478_v55 = vsel %vm445_vm0, %v1043_v41, 0.0  ;;  %v554_v30 = vld [vmem:[#allocation2 + $0x4] sm:$0x3] }
  0x61   : > { %v424_v47 = vmul.f32 %v420_v19, %v1410_v49  ;;  %v432_v48 = vsub.f32 1.0, %v1410_v49  ;;  %v480_v13 = vsel %vm445_vm0, %v1045_v12, 0.0  ;;  %v425_v32 = vmul.f32 %v421_v42, %v330_v3 }
  0x62   : > { %v426_v44 = vmul.f32 %v422_v43, %v331_v50  ;;  %v427_v26 = vmul.f32 %v423_v45, %v332_v25  ;;  %v479_v15 = vadd.f32 %v478_v55, %v477_v46  ;;  %v433_v16 = vmul.f32 %v429_v37, %v342_v33  ;;  %v596_v33 = vld [vmem:[#allocation2 + $0x8] sm:$0x3]  ;;  %v598_v45 = vld [vmem:[#allocation2 + $0xc] sm:$0x3] }
  0x63   : > { %v428_v52 = vmul.f32 %v424_v47, %v333_v31  ;;  %v434_v53 = vmul.f32 %v430_v35, %v343_v29  ;;  %v435_v22 = vmul.f32 %v431_v38, %v344_v36  ;;  %v436_v54 = vmul.f32 %v432_v48, %v345_v2 }
  0x64   : > { %v556_v56 = vsel %vm445_vm0, %v552_v51, 0.0  ;;  %v563_v57 = vsel %vm445_vm0, %v553_v14, 0.0  ;;  %v481_v58 = vadd.f32 %v480_v13, %v479_v15  ;;  %v437_v49 = vadd.f32 %v433_v16, %v425_v32  ;;  %v599_v32 = vld [vmem:[#allocation2 + $0xe] sm:$0x3] }
  0x65   : > { %v438_v59 = vadd.f32 %v434_v53, %v426_v44  ;;  %v557_v0 = vrot.slane %v556_v56, 4  ;;  %v439_v60 = vadd.f32 %v435_v22, %v427_v26  ;;  %v440_v61 = vadd.f32 %v436_v54, %v428_v52 }
  0x66   : > { %v564_v63 = vrot.slane %v563_v57, 4  ;;  %v570_v3 = vsel %vm445_vm0, %v554_v30, 0.0  ;;  %1046 = vlog2.f32 %v481_v58  ;;  %v441_v4 = vsub.f32 0.0, %v437_v49 }
  0x67   : > { %v442_v6 = vsub.f32 0.0, %v438_v59  ;;  %v558_v50 = vadd.f32 %v557_v0, %v556_v56  ;;  %v443_v8 = vsub.f32 0.0, %v439_v60  ;;  %v444_v11 = vsub.f32 0.0, %v440_v61  ;;  %v637_v56 = vld [vmem:[#allocation2 + $0x10] sm:$0x3] }
  0x68   : > { %v565_v17 = vadd.f32 %v564_v63, %v563_v57  ;;  %v571_v18 = vrot.slane %v570_v3, 4  ;;  %v446_v20 = vsel %vm445_vm0, %v441_v4, 0.0  ;;  %v577_v25 = vsel %vm445_vm0, %v555_v62, 0.0  ;;  %v513_v57 = vld [vmem:[#allocation3 + $0x2] sm:$0x3] }
  0x69   : > { %v447_v23 = vsel %vm445_vm0, %v442_v6, 0.0  ;;  %v559_v24 = vrot.slane %v558_v50, 2  ;;  %v449_v28 = vsel %vm445_vm0, %v443_v8, 0.0  ;;  %v451_v1 = vsel %vm445_vm0, %v444_v11, 0.0  ;;  %v638_v63 = vld [vmem:[#allocation2 + $0x12] sm:$0x3] }
  0x6a   : > { %v448_v27 = vadd.f32 %v447_v23, %v446_v20  ;;  %v566_v31 = vrot.slane %v565_v17, 2  ;;  %v572_v34 = vadd.f32 %v571_v18, %v570_v3  ;;  %v578_v36 = vrot.slane %v577_v25, 4  ;;  %v639_v18 = vld [vmem:[#allocation2 + $0x14] sm:$0x3]  ;;  %v640_v20 = vld [vmem:[#allocation2 + $0x16] sm:$0x3] }
  0x6b   : > { %v560_v29 = vadd.f32 %v559_v24, %v558_v50  ;;  %vm588_vm11 = vcmask 1041409   ;;  %vm590_vm12 = vcmask 1042434   ;;  %v600_v41 = vsel %vm445_vm0, %v596_v33, 0.0  ;;  %v719_v33 = vld [vmem:[#allocation2 + $0x20] sm:$0x3] }
  0x6c   : > { %v450_v2 = vadd.f32 %v449_v28, %v448_v27  ;;  %v567_v37 = vadd.f32 %v566_v31, %v565_v17  ;;  %v1047_v21 = vpop.eup %1046  ;;  %v573_v35 = vrot.slane %v572_v34, 2  ;;  %v579_v38 = vadd.f32 %v578_v36, %v577_v25 }
  0x6d   : > { %v561_v19 = vrot.slane %v560_v29, 1  ;;  %v483_v39 = vmul.f32 0.6931472, %v1047_v21  ;;  %v601_v12 = vrot.slane %v600_v41, 4  ;;  %v607_v48 = vsel %vm445_vm0, %v597_v9, 0.0 }
  0x6e   : > { %v452_v42 = vadd.f32 %v451_v1, %v450_v2  ;;  %v568_v43 = vrot.slane %v567_v37, 1  ;;  %v574_v55 = vadd.f32 %v573_v35, %v572_v34  ;;  %v580_v47 = vrot.slane %v579_v38, 2 }
  0x6f   : > { %v562_v46 = vadd.f32 %v561_v19, %v560_v29  ;;  %v484_v51 = vadd.f32 %v483_v39, %v1525_v7  ;;  %v602_v44 = vadd.f32 %v601_v12, %v600_v41  ;;  %v608_v52 = vrot.slane %v607_v48, 4  ;;  %v720_v12 = vld [vmem:[#allocation2 + $0x22] sm:$0x3] }
  0x70   : > { %v454_v14 = vadd.f32 %v453_v40, %v452_v42  ;;  %v569_v13 = vadd.f32 %v568_v43, %v567_v37  ;;  %v575_v26 = vrot.slane %v574_v55, 1  ;;  %v581_v15 = vadd.f32 %v580_v47, %v579_v38 }
  0x71   : > { %v614_v16 = vsel %vm445_vm0, %v598_v45, 0.0  ;;  %v514_v53 = vsub.f32 %v484_v51, %v1500_v5  ;;  %v603_v22 = vrot.slane %v602_v44, 2  ;;  %v609_v49 = vadd.f32 %v608_v52, %v607_v48 }
  0x72   : > { %455 = vst [vmem:[#allocation3] sm:$0x3] %v454_v14  ;;  %v589_v30 = vsel %vm588_vm11, %v569_v13, %v562_v46  ;;  %v615_v54 = vrot.slane %v614_v16, 4  ;;  %v576_v7 = vadd.f32 %v575_v26, %v574_v55  ;;  %v582_v58 = vrot.slane %v581_v15, 1 }
  0x73   : > { %v621_v59 = vsel %vm445_vm0, %v599_v32, 0.0  ;;  %v515_v0 = vmul.f32 %v514_v53, %v1506_v10  ;;  %v604_v60 = vadd.f32 %v603_v22, %v602_v44  ;;  %v610_v4 = vrot.slane %v609_v49, 2  ;;  %v721_v44 = vld [vmem:[#allocation2 + $0x24] sm:$0x3] }
  0x74   : > { %v616_v61 = vadd.f32 %v615_v54, %v614_v16  ;;  %v622_v62 = vrot.slane %v621_v59, 4  ;;  %v583_v3 = vadd.f32 %v582_v58, %v581_v15  ;;  %v591_v5 = vsel %vm590_vm12, %v576_v7, %v589_v30  ;;  %v722_v54 = vld [vmem:[#allocation2 + $0x26] sm:$0x3] }
  0x75   : > { %v641_v6 = vsel %vm445_vm0, %v637_v56, 0.0  ;;  %v516_v50 = vadd.f32 %v515_v0, %v513_v57  ;;  %v605_v8 = vrot.slane %v604_v60, 1  ;;  %v611_v10 = vadd.f32 %v610_v4, %v609_v49  ;;  %v778_v57 = vld [vmem:[#allocation3 + $0x4] sm:$0x3] }
  0x76   : > { %v617_v11 = vrot.slane %v616_v61, 2  ;;  %v623_v17 = vadd.f32 %v622_v62, %v621_v59  ;;  %v593_v23 = vsel %vm592_vm13, %v583_v3, %v591_v5  ;;  %v642_v24 = vrot.slane %v641_v6, 4 }
  0x77   : > { %v648_v25 = vsel %vm445_vm0, %v638_v63, 0.0  ;;  %517 = vst [vmem:[#allocation3 + $0x2] sm:$0x3] %v516_v50  ;;  %v606_v27 = vadd.f32 %v605_v8, %v604_v60  ;;  %v612_v29 = vrot.slane %v611_v10, 1  ;;  %v655_v36 = vsel %vm445_vm0, %v639_v18, 0.0 }
  0x78   : > { %v618_v28 = vadd.f32 %v617_v11, %v616_v61  ;;  %v624_v1 = vrot.slane %v623_v17, 2  ;;  %v649_v31 = vrot.slane %v648_v25, 4  ;;  %595 = vst [vmem:[%s1580_s27] sm:$0xf] %v593_v23  ;;  %v643_v34 = vadd.f32 %v642_v24, %v641_v6  ;;  %v787_v6 = vld [vmem:[#allocation3 + $0x6] sm:$0x3] }
  0x79   : > { %v662_v2 = vsel %vm445_vm0, %v640_v20, 0.0  ;;  %v656_v40 = vrot.slane %v655_v36, 4  ;;  %v613_v19 = vadd.f32 %v612_v29, %v611_v10  ;;  %v723_v41 = vsel %vm445_vm0, %v719_v33, 0.0  ;;  %v678_v24 = vld [vmem:[#allocation2 + $0x18] sm:$0x3] }
  0x7a   : > { %v619_v37 = vrot.slane %v618_v28, 1  ;;  %v625_v9 = vadd.f32 %v624_v1, %v623_v17  ;;  %v650_v21 = vadd.f32 %v649_v31, %v648_v25  ;;  %v644_v35 = vrot.slane %v643_v34, 2  ;;  %v679_v31 = vld [vmem:[#allocation2 + $0x1a] sm:$0x3] }
  0x7b   : > { %v663_v38 = vrot.slane %v662_v2, 4  ;;  %v657_v45 = vadd.f32 %v656_v40, %v655_v36  ;;  %v632_v46 = vsel %vm588_vm11, %v613_v19, %v606_v27  ;;  %v724_v48 = vrot.slane %v723_v41, 4 }
  0x7c   : > { %v620_v39 = vadd.f32 %v619_v37, %v618_v28  ;;  %v626_v42 = vrot.slane %v625_v9, 1  ;;  %v651_v43 = vrot.slane %v650_v21, 2  ;;  %v645_v55 = vadd.f32 %v644_v35, %v643_v34 }
  0x7d   : > { %v664_v47 = vadd.f32 %v663_v38, %v662_v2  ;;  %v658_v32 = vrot.slane %v657_v45, 2  ;;  %v725_v52 = vadd.f32 %v724_v48, %v723_v41  ;;  %v730_v16 = vsel %vm445_vm0, %v720_v12, 0.0  ;;  %v680_v2 = vld [vmem:[#allocation2 + $0x1c] sm:$0x3] }
  0x7e   : > { %v627_v51 = vadd.f32 %v626_v42, %v625_v9  ;;  %v633_v14 = vsel %vm590_vm12, %v620_v39, %v632_v46  ;;  %v652_v13 = vadd.f32 %v651_v43, %v650_v21  ;;  %v646_v26 = vrot.slane %v645_v55, 1 }
  0x7f   : > { %v665_v15 = vrot.slane %v664_v47, 2  ;;  %v659_v22 = vadd.f32 %v658_v32, %v657_v45  ;;  %v731_v56 = vrot.slane %v730_v16, 4  ;;  %v726_v49 = vrot.slane %v725_v52, 2 }
  0x80   : > { %v634_v53 = vsel %vm592_vm13, %v627_v51, %v633_v14  ;;  %v653_v30 = vrot.slane %v652_v13, 1  ;;  %v647_v7 = vadd.f32 %v646_v26, %v645_v55  ;;  %v737_v59 = vsel %vm445_vm0, %v721_v44, 0.0  ;;  %v681_v55 = vld [vmem:[#allocation2 + $0x1e] sm:$0x3] }
  0x81   : > { %636 = vst [vmem:[%s1580_s27 + $0x4] sm:$0xf] %v634_v53  ;;  %v666_v58 = vadd.f32 %v665_v15, %v664_v47  ;;  %v660_v60 = vrot.slane %v659_v22, 1  ;;  %v732_v61 = vadd.f32 %v731_v56, %v730_v16  ;;  %v738_v62 = vrot.slane %v737_v59, 4  ;;  %v769_v16 = vld [vmem:[#allocation3 + $0x2] sm:$0x3] }
  0x82   : > { %v654_v0 = vadd.f32 %v653_v30, %v652_v13  ;;  %v727_v3 = vadd.f32 %v726_v49, %v725_v52  ;;  %v744_v5 = vsel %vm445_vm0, %v722_v54, 0.0  ;;  %v779_v4 = vsel %vm445_vm0, %v778_v57, 0.0  ;;  %v760_v49 = vld [vmem:[#allocation3] sm:$0x3] }
  0x83   : > { %v667_v63 = vrot.slane %v666_v58, 1  ;;  %v661_v50 = vadd.f32 %v660_v60, %v659_v22  ;;  %v733_v11 = vrot.slane %v732_v61, 2  ;;  %v739_v17 = vadd.f32 %v738_v62, %v737_v59 }
  0x84   : > { %v673_v8 = vsel %vm588_vm11, %v654_v0, %v647_v7  ;;  %v728_v20 = vrot.slane %v727_v3, 1  ;;  %v745_v23 = vrot.slane %v744_v5, 4  ;;  %v780_v10 = vrot.slane %v779_v4, 4 }
  0x85   : > { %v668_v18 = vadd.f32 %v667_v63, %v666_v58  ;;  %v674_v25 = vsel %vm590_vm12, %v661_v50, %v673_v8  ;;  %v734_v27 = vadd.f32 %v733_v11, %v732_v61  ;;  %v740_v28 = vrot.slane %v739_v17, 2 }
  0x86   : > { %v788_v1 = vsel %vm445_vm0, %v787_v6, -inf  ;;  %v729_v29 = vadd.f32 %v728_v20, %v727_v3  ;;  %v746_v34 = vadd.f32 %v745_v23, %v744_v5  ;;  %v781_v36 = vadd.f32 %v780_v10, %v779_v4 }
  0x87   : > { %v675_v33 = vsel %vm592_vm13, %v668_v18, %v674_v25  ;;  %v735_v37 = vrot.slane %v734_v27, 1  ;;  %v741_v9 = vadd.f32 %v740_v28, %v739_v17  ;;  %v789_v21 = vrot.slane %v788_v1, 4 }
  0x88   : > { %677 = vst [vmem:[%s1580_s27 + $0x8] sm:$0xf] %v675_v33  ;;  %v682_v40 = vsel %vm445_vm0, %v678_v24, 0.0  ;;  %v747_v19 = vrot.slane %v746_v34, 2  ;;  %v782_v35 = vrot.slane %v781_v36, 2  ;;  %v689_v41 = vsel %vm445_vm0, %v679_v31, 0.0 }
  0x89   : > { %v683_v38 = vrot.slane %v682_v40, 4  ;;  %v736_v39 = vadd.f32 %v735_v37, %v734_v27  ;;  %v742_v42 = vrot.slane %v741_v9, 1  ;;  %v790_v43 = vmax.f32 %v788_v1, %v789_v21 }
  0x8a   : > { %v690_v45 = vrot.slane %v689_v41, 4  ;;  %v748_v12 = vadd.f32 %v747_v19, %v746_v34  ;;  %v783_v46 = vadd.f32 %v782_v35, %v781_v36  ;;  %v696_v48 = vsel %vm445_vm0, %v680_v2, 0.0 }
  0x8b   : > { %v684_v47 = vadd.f32 %v683_v38, %v682_v40  ;;  %v743_v51 = vadd.f32 %v742_v42, %v741_v9  ;;  %v755_v14 = vsel %vm588_vm11, %v736_v39, %v729_v29  ;;  %v791_v13 = vrot.slane %v790_v43, 2 }
  0x8c   : > { %v691_v32 = vadd.f32 %v690_v45, %v689_v41  ;;  %v749_v44 = vrot.slane %v748_v12, 1  ;;  %v784_v26 = vrot.slane %v783_v46, 1  ;;  %v697_v52 = vrot.slane %v696_v48, 4 }
  0x8d   : > { %v685_v15 = vrot.slane %v684_v47, 2  ;;  %v756_v53 = vsel %vm590_vm12, %v743_v51, %v755_v14  ;;  %v792_v30 = vmax.f32 %v790_v43, %v791_v13  ;;  %v703_v54 = vsel %vm445_vm0, %v681_v55, 0.0 }
  0x8e   : > { %v692_v22 = vrot.slane %v691_v32, 2  ;;  %v750_v56 = vadd.f32 %v749_v44, %v748_v12  ;;  %v785_v57 = vadd.f32 %v784_v26, %v783_v46  ;;  %v698_v58 = vadd.f32 %v697_v52, %v696_v48 }
  0x8f   : > { %v686_v7 = vadd.f32 %v685_v15, %v684_v47  ;;  %v793_v59 = vrot.slane %v792_v30, 1  ;;  %v704_v60 = vrot.slane %v703_v54, 4  ;;  %v770_v61 = vsel %vm445_vm0, %v769_v16, 0.0 }
  0x90   : > { %v693_v0 = vadd.f32 %v692_v22, %v691_v32  ;;  %v757_v62 = vsel %vm592_vm13, %v750_v56, %v756_v53  ;;  %786 = vst [vmem:[%s1580_s27 + $0x16] sm:$0x1] %v785_v57  ;;  %v699_v3 = vrot.slane %v698_v58, 2  ;;  %v771_v5 = vrot.slane %v770_v61, 4 }
  0x91   : > { %v687_v63 = vrot.slane %v686_v7, 1  ;;  %759 = vst [vmem:[%s1580_s27 + $0x10] sm:$0xf] %v757_v62  ;;  %v794_v4 = vmax.f32 %v792_v30, %v793_v59  ;;  %v705_v50 = vadd.f32 %v704_v60, %v703_v54  ;;  %v761_v8 = vsel %vm445_vm0, %v760_v49, 0.0 }
  0x92   : > { %v694_v6 = vrot.slane %v693_v0, 1  ;;  %v700_v17 = vadd.f32 %v699_v3, %v698_v58  ;;  %v772_v18 = vadd.f32 %v771_v5, %v770_v61  ;;  %v762_v20 = vrot.slane %v761_v8, 4 }
  0x93   : > { %v688_v11 = vadd.f32 %v687_v63, %v686_v7  ;;  %795 = vst [vmem:[%s1580_s27 + $0x17] sm:$0x1] %v794_v4  ;;  %v706_v10 = vrot.slane %v705_v50, 2 }
  0x94   : > { %v695_v23 = vadd.f32 %v694_v6, %v693_v0  ;;  %v701_v24 = vrot.slane %v700_v17, 1  ;;  %v773_v25 = vrot.slane %v772_v18, 2  ;;  %v763_v27 = vadd.f32 %v762_v20, %v761_v8 }
  0x95   : > { %v707_v28 = vadd.f32 %v706_v10, %v705_v50 }
  0x96   : > { %v714_v1 = vsel %vm588_vm11, %v695_v23, %v688_v11  ;;  %v702_v31 = vadd.f32 %v701_v24, %v700_v17  ;;  %v774_v33 = vadd.f32 %v773_v25, %v772_v18  ;;  %v764_v29 = vrot.slane %v763_v27, 2 }
  0x97   : > { %v708_v34 = vrot.slane %v707_v28, 1 }
  0x98   : > { %v715_v36 = vsel %vm590_vm12, %v702_v31, %v714_v1  ;;  %v775_v2 = vrot.slane %v774_v33, 1  ;;  %v765_v37 = vadd.f32 %v764_v29, %v763_v27 }
  0x99   : > { %v709_v9 = vadd.f32 %v708_v34, %v707_v28 }
  0x9a   : > { %v776_v21 = vadd.f32 %v775_v2, %v774_v33  ;;  %v766_v40 = vrot.slane %v765_v37, 1 }
  0x9b   : > { %v716_v19 = vsel %vm592_vm13, %v709_v9, %v715_v36 }
  0x9c   : > { %718 = vst [vmem:[%s1580_s27 + $0xc] sm:$0xf] %v716_v19  ;;  %v767_v35 = vadd.f32 %v766_v40, %v765_v37 }
  0x9d   : > { %777 = vst [vmem:[%s1580_s27 + $0x15] sm:$0x1] %v776_v21 }
  0x9e   : > { %768 = vst [vmem:[%s1580_s27 + $0x14] sm:$0x1] %v767_v35 }
  0x9f   : > { %1135 = shalt.err (!%p1132_p13)
}
  0xa0   : > { %s1201_s3 = smov 128   ;;  %s1202_s25 = smov 8  }
  0xa1   : > { %944 = dma.vmem_to_hbm [thread:$0]  (%p1269_p9), %s810_s12, 384, %s812_s18, %s797_s20, %s1201_s3, %s1201_s3, %s1202_s25  }
  0xa2 PF: > { %s826_s26 = sand.u32 1, %s1174_s9   ;;  %p954_p0 = pnand %p923_p12, %p1276_p11 }
  0xa3   : > { %s827_s21 = scalar_lea.sflag [#allocation6], %s826_s26 }
  0xa4   : > { %p955_p1 = pneg %p954_p0 }
  0xa6   : > { %1169 = dma.done.wait (%p955_p1), %s827_s21, 384  }
  0xa7   : > { %1171 = vsyncadd (%p955_p1), %s827_s21, 4294966912  ;;  %s21_s14 = sadd.s32 1, %s1194_s14   ;;  %s1667_s9 = smov %s1178_s10 }
  0xa8   : > { %p18_p2 = scmp.ge.s32.totalorder %s21_s14, 4   ;;  %s1668_s10 = smov %s1182_s11 }
  0xa9   : > { %s1669_s11 = smov %s1274_s23  ;;  %s1670_s12 = smov %s1190_s13 }
  0xaa   : > { %s1671_s13 = smov %s1673_s17  ;;  %20 = sbr.rel (!%p18_p2) target bundleno = 8 (0x8), region = 101 }
  0xaf   :  { %833 = vsyncpa [#allocation5], 1 }
  0xb0   :  { %835 = vsyncpa [#allocation5 + $0x1], 1 }
  0xb1   :  { %836 = vsyncpa [#allocation8], 1 }
  0xb2   :  { %838 = vsyncpa [#allocation8 + $0x1], 1 }
  0xb3   :  { %839 = vsyncpa [#allocation6], 1 }
  0xb4   :  { %841 = vsyncpa [#allocation6 + $0x1], 1 }

</bundles_post_ra>
